<compile_context>
chip_gen: v7x
topology: tpu7x:2x2x1
jax: 0.10.0
libtpu: 0.0.40
codegen_flags: <defaults>
</compile_context>

<pallas_src>
import functools
import math

import numpy as np

import jax
import jax.numpy as jnp
from jax.experimental import pallas as pl
from jax.experimental.pallas import tpu as pltpu


# -----------------------------------------------------------------------------
# Fused encoder-layer kernel (one grid step == one batch element)
# -----------------------------------------------------------------------------
def _autoformer_layer_kernel(x_ref, wqkv_ref, bqkv_ref, wo_ref, bo_ref,
                             w1_ref, w2_ref, maw_ref, out_ref, corr_ref,
                             *, seq_len, d_model, top_k):
    f32, bf16 = jnp.float32, jnp.bfloat16
    L, D = seq_len, d_model
    xb = x_ref[0]                                                    # [L, D] f32

    # ---- Q/K/V projections: one packed bf16 matmul, f32 accumulation ---------
    qkv = jnp.dot(xb.astype(bf16), wqkv_ref[...].astype(bf16),
                  preferred_element_type=f32) + bqkv_ref[...]
    q = qkv[:, :D]
    k = qkv[:, D:2 * D]
    v = qkv[:, 2 * D:]

    # ---- circular auto-correlation, averaged over heads*channels -------------
    # corr[tau] = sum_t <q[(t+tau) % L], k[t]>  ==  circular diagonal tau of Q K^T
    s_mat = jax.lax.dot_general(
        q.astype(bf16), k.astype(bf16),
        dimension_numbers=(((1,), (1,)), ((), ())),
        preferred_element_type=f32)                                  # [L, L]
    ii = jax.lax.broadcasted_iota(jnp.int32, (L, L), 0)
    jj = jax.lax.broadcasted_iota(jnp.int32, (L, L), 1)
    diff = ii - jj                                                   # in (-L, L)
    lane = jax.lax.broadcasted_iota(jnp.int32, (1, L), 1)

    # TODO(synk): O(L^3) diagonal extraction; for long sequences compute the
    # correlation with an FFT outside the kernel (no Pallas FFT) or a strided roll.
    cvec = jnp.zeros((1, L), f32)
    for tau in range(L):
        mask = (diff == tau) | (diff == tau - L)                     # (i-j) mod L == tau
        c_tau = jnp.sum(jnp.where(mask, s_mat, 0.0), keepdims=True)  # [1, 1]
        cvec = cvec + jnp.where(lane == tau, c_tau, 0.0)
    cvec = cvec * (1.0 / D)                                          # mean over H*E chans

    # ---- top-k delays + softmax over their correlations (inference branch) ---
    work = cvec
    top_vals, top_idx = [], []
    for _ in range(top_k):
        m = jnp.max(work, keepdims=True)                             # [1, 1]
        idx = jnp.min(jnp.where(work == m, lane, L), keepdims=True)  # [1, 1] int32
        top_vals.append(m)
        top_idx.append(idx)
        work = jnp.where(lane == idx, -1e30, work)
    exps = [jnp.exp(wv - top_vals[0]) for wv in top_vals]            # top_vals[0] is max
    denom = exps[0]
    for e in exps[1:]:
        denom = denom + e
    inv_denom = pl.reciprocal(denom, approx=True)                    # EUP slot
    probs = [e * inv_denom for e in exps]                            # [1, 1] each

    # ---- time-delay aggregation as a matmul -----------------------------------
    # agg[t, :] = sum_i probs_i * V[(t + delay_i) % L, :]   ==   P @ V
    sdiff = jj - ii                                                  # (s - t), in (-L, L)
    p_mat = jnp.zeros((L, L), f32)
    for i in range(top_k):
        hit = (sdiff == top_idx[i]) | (sdiff == top_idx[i] - L)
        p_mat = p_mat + probs[i] * hit.astype(f32)
    agg = jnp.dot(p_mat.astype(bf16), v.astype(bf16), preferred_element_type=f32)

    # ---- output projection + residual + series decomposition 1 ---------------
    x_corr = jnp.dot(agg.astype(bf16), wo_ref[...].astype(bf16),
                     preferred_element_type=f32) + bo_ref[...]
    x1 = xb + x_corr                                                 # dropout == identity
    x1 = x1 - jnp.dot(maw_ref[...], x1, preferred_element_type=f32)  # seasonal part

    # ---- conv-FFN (1x1 convolutions) + residual + series decomposition 2 -----
    h = jnp.maximum(jnp.dot(x1.astype(bf16), w1_ref[...].astype(bf16),
                            preferred_element_type=f32), 0.0)        # relu
    ff = jnp.dot(h.astype(bf16), w2_ref[...].astype(bf16),
                 preferred_element_type=f32)
    x2 = x1 + ff
    out_ref[0] = x2 - jnp.dot(maw_ref[...], x2, preferred_element_type=f32)

    # per-lag mean correlation (cheap diagnostic; reference attn is None by default)
    corr_ref[0] = cvec


# -----------------------------------------------------------------------------
# Host-side helpers
# -----------------------------------------------------------------------------
def _moving_average_matrix(seq_len, kernel_size):
    """[L, L] matrix equivalent to SeriesDecomposition's moving average:
    replicate-pad (kernel-1)//2 steps on both ends, then AvgPool1d(kernel, stride=1)."""
    pad = (kernel_size - 1) // 2
    w = np.zeros((seq_len, seq_len), np.float32)
    for t in range(seq_len):
        for i in range(kernel_size):
            s = min(max(t - pad + i, 0), seq_len - 1)
            w[t, s] += 1.0 / kernel_size
    return jnp.asarray(w)


def autoformer_encoder_layer(x, params, *, kernel_size=25, factor=1):
    """Eval-mode forward of AutoformerEncoderLayer with a standard
    AutoCorrelationLayer (Q/K/V/out projections around AutoCorrelation).

    Returns (x_out [B,L,D], corr [B,L]) where corr is the head/channel-averaged
    circular auto-correlation per time lag (the quantity driving the top-k delays).
    """
    B, L, D = x.shape
    F = params["w1"].shape[1]
    top_k = max(1, min(int(factor * math.log(L)), L))
    maw = _moving_average_matrix(L, kernel_size)

    kernel = functools.partial(_autoformer_layer_kernel,
                               seq_len=L, d_model=D, top_k=top_k)
    const = lambda b: (0, 0)

    out, corr = pl.pallas_call(
        kernel,
        out_shape=(jax.ShapeDtypeStruct((B, L, D), jnp.float32),
                   jax.ShapeDtypeStruct((B, 1, L), jnp.float32)),
        grid=(B,),
        in_specs=[
            pl.BlockSpec((1, L, D), lambda b: (b, 0, 0)),    # x
            pl.BlockSpec((D, 3 * D), const),                 # packed Wq|Wk|Wv
            pl.BlockSpec((1, 3 * D), const),                 # packed q/k/v bias
            pl.BlockSpec((D, D), const),                     # out-projection weight
            pl.BlockSpec((1, D), const),                     # out-projection bias
            pl.BlockSpec((D, F), const),                     # conv1 (1x1) weight, no bias
            pl.BlockSpec((F, D), const),                     # conv2 (1x1) weight, no bias
            pl.BlockSpec((L, L), const),                     # moving-average matrix
        ],
        out_specs=(pl.BlockSpec((1, L, D), lambda b: (b, 0, 0)),
                   pl.BlockSpec((1, 1, L), lambda b: (b, 0, 0))),
        compiler_params=pltpu.CompilerParams(
            dimension_semantics=("parallel",),
            vmem_limit_bytes=32 * 1024 * 1024),
    )(x, params["wqkv"], params["bqkv"], params["wo"], params["bo"],
      params["w1"], params["w2"], maw)
    return out, corr.reshape(B, L)


def init_params(key, d_model, ff_dim):
    def uniform(k, fan_in, shape):
        bound = 1.0 / math.sqrt(fan_in)
        return jax.random.uniform(k, shape, jnp.float32, -bound, bound)

    ks = jax.random.split(key, 6)
    return dict(
        wqkv=uniform(ks[0], d_model, (d_model, 3 * d_model)),
        bqkv=uniform(ks[1], d_model, (1, 3 * d_model)),
        wo=uniform(ks[2], d_model, (d_model, d_model)),
        bo=uniform(ks[3], d_model, (1, d_model)),
        w1=uniform(ks[4], d_model, (d_model, ff_dim)),   # Conv1d(D, F, 1, bias=False)
        w2=uniform(ks[5], ff_dim, (ff_dim, d_model)),    # Conv1d(F, D, 1, bias=False)
    )


if __name__ == "__main__":
    B, L, D = 4, 16, 128          # batch, sequence length, model dim (lane-dense)
    ff_dim = 4 * D                # reference default: ff_dim = 4 * model_dim
    kernel_size = 25              # SeriesDecomposition default kernel size
    factor = 1                    # AutoCorrelation factor -> top_k = int(log(L)) = 2

    key = jax.random.PRNGKey(0)
    kx, kp = jax.random.split(key)
    x = jax.random.normal(kx, (B, L, D), dtype=jnp.float32)
    params = init_params(kp, D, ff_dim)

    out, corr = autoformer_encoder_layer(
        x, params, kernel_size=kernel_size, factor=factor)
    out = jax.block_until_ready(out)
    corr = jax.block_until_ready(corr)

    assert out.shape == (B, L, D)
    assert corr.shape == (B, L)
    assert bool(jnp.all(jnp.isfinite(out)))
    assert bool(jnp.all(jnp.isfinite(corr)))
    print("KERNEL_OK")
</pallas_src>

<mosaic_0001>
module attributes {stable_mosaic.version = 11 : i64} {
  func.func @_autoformer_layer_kernel(%arg0: i32, %arg1: memref<1x16x128xf32, #tpu.memory_space<vmem>>, %arg2: memref<128x384xf32, #tpu.memory_space<vmem>>, %arg3: memref<1x384xf32, #tpu.memory_space<vmem>>, %arg4: memref<128x128xf32, #tpu.memory_space<vmem>>, %arg5: memref<1x128xf32, #tpu.memory_space<vmem>>, %arg6: memref<128x512xf32, #tpu.memory_space<vmem>>, %arg7: memref<512x128xf32, #tpu.memory_space<vmem>>, %arg8: memref<16x16xf32, #tpu.memory_space<vmem>>, %arg9: memref<1x16x128xf32, #tpu.memory_space<vmem>>, %arg10: memref<1x1x16xf32, #tpu.memory_space<vmem>>) attributes {dimension_semantics = [#tpu.dimension_semantics<parallel>], iteration_bounds = array<i64: 4>, scalar_prefetch = 0 : i64, scratch_operands = 0 : i64, tpu.core_type = #tpu.core_type<tc>, window_params = [{transform_indices = @transform_0, window_bounds = array<i64: 1, 16, 128>}, {pipeline_mode = #tpu.pipeline_mode<synchronous>, transform_indices = @transform_1, window_bounds = array<i64: 128, 384>}, {pipeline_mode = #tpu.pipeline_mode<synchronous>, transform_indices = @transform_2, window_bounds = array<i64: 1, 384>}, {pipeline_mode = #tpu.pipeline_mode<synchronous>, transform_indices = @transform_3, window_bounds = array<i64: 128, 128>}, {pipeline_mode = #tpu.pipeline_mode<synchronous>, transform_indices = @transform_4, window_bounds = array<i64: 1, 128>}, {pipeline_mode = #tpu.pipeline_mode<synchronous>, transform_indices = @transform_5, window_bounds = array<i64: 128, 512>}, {pipeline_mode = #tpu.pipeline_mode<synchronous>, transform_indices = @transform_6, window_bounds = array<i64: 512, 128>}, {pipeline_mode = #tpu.pipeline_mode<synchronous>, transform_indices = @transform_7, window_bounds = array<i64: 16, 16>}, {transform_indices = @transform_8, window_bounds = array<i64: 1, 16, 128>}, {transform_indices = @transform_9, window_bounds = array<i64: 1, 1, 16>}]} {
    %c0 = arith.constant 0 : index
    %c0_0 = arith.constant 0 : index
    %c0_1 = arith.constant 0 : index
    %0 = vector.load %arg1[%c0, %c0_0, %c0_1] : memref<1x16x128xf32, #tpu.memory_space<vmem>>, vector<1x16x128xf32>
    %1 = vector.shape_cast %0 : vector<1x16x128xf32> to vector<16x128xf32>
    %2 = arith.truncf %1 : vector<16x128xf32> to vector<16x128xbf16>
    %c0_2 = arith.constant 0 : index
    %c0_3 = arith.constant 0 : index
    %3 = vector.load %arg2[%c0_2, %c0_3] : memref<128x384xf32, #tpu.memory_space<vmem>>, vector<128x384xf32>
    %4 = arith.truncf %3 : vector<128x384xf32> to vector<128x384xbf16>
    %cst = arith.constant dense<0.000000e+00> : vector<16x384xf32>
    %5 = tpu.matmul %2, %4, %cst {dimension_numbers = #tpu.dot_dimension_numbers<[1], [0], [0], [1], [0, 0, 1, 1], [], []>} : vector<16x128xbf16>, vector<128x384xbf16>, vector<16x384xf32> -> vector<16x384xf32>
    %c0_4 = arith.constant 0 : index
    %c0_5 = arith.constant 0 : index
    %6 = vector.load %arg3[%c0_4, %c0_5] : memref<1x384xf32, #tpu.memory_space<vmem>>, vector<1x384xf32>
    %7 = vector.broadcast %6 : vector<1x384xf32> to vector<16x384xf32>
    %8 = arith.addf %5, %7 : vector<16x384xf32>
    %9 = vector.extract_strided_slice %8 {offsets = [0, 0], sizes = [16, 128], strides = [1, 1]} : vector<16x384xf32> to vector<16x128xf32>
    %10 = vector.extract_strided_slice %8 {offsets = [0, 128], sizes = [16, 128], strides = [1, 1]} : vector<16x384xf32> to vector<16x128xf32>
    %11 = vector.extract_strided_slice %8 {offsets = [0, 256], sizes = [16, 128], strides = [1, 1]} : vector<16x384xf32> to vector<16x128xf32>
    %12 = arith.truncf %9 : vector<16x128xf32> to vector<16x128xbf16>
    %13 = arith.truncf %10 : vector<16x128xf32> to vector<16x128xbf16>
    %cst_6 = arith.constant dense<0.000000e+00> : vector<16x16xf32>
    %14 = tpu.matmul %12, %13, %cst_6 {dimension_numbers = #tpu.dot_dimension_numbers<[1], [1], [0], [0], [0, 0, 1, 0], [], []>} : vector<16x128xbf16>, vector<16x128xbf16>, vector<16x16xf32> -> vector<16x16xf32>
    %15 = tpu.iota {dimensions = array<i32: 0>} : vector<16x16xi32>
    %16 = tpu.iota {dimensions = array<i32: 1>} : vector<16x16xi32>
    %17 = arith.subi %15, %16 : vector<16x16xi32>
    %18 = tpu.iota {dimensions = array<i32: 1>} : vector<1x16xi32>
    %cst_7 = arith.constant 0.000000e+00 : f32
    %19 = vector.broadcast %cst_7 : f32 to vector<1x16xf32>
    %c0_i32 = arith.constant 0 : i32
    %20 = vector.broadcast %c0_i32 : i32 to vector<16x16xi32>
    %21 = arith.cmpi eq, %17, %20 : vector<16x16xi32>
    %c-16_i32 = arith.constant -16 : i32
    %22 = vector.broadcast %c-16_i32 : i32 to vector<16x16xi32>
    %23 = arith.cmpi eq, %17, %22 : vector<16x16xi32>
    %24 = arith.ori %21, %23 : vector<16x16xi1>
    %cst_8 = arith.constant 0.000000e+00 : f32
    %25 = vector.broadcast %cst_8 : f32 to vector<16x16xf32>
    %26 = arith.select %24, %14, %25 : vector<16x16xi1>, vector<16x16xf32>
    %27 = vector.shape_cast %26 : vector<16x16xf32> to vector<1x16x16xf32>
    %cst_9 = arith.constant dense<0.000000e+00> : vector<1xf32>
    %28 = vector.multi_reduction <add>, %27, %cst_9 [1, 2] : vector<1x16x16xf32> to vector<1xf32>
    %29 = vector.shape_cast %28 : vector<1xf32> to vector<1x1x1xf32>
    %30 = vector.extract %29[0, 0, 0] : f32 from vector<1x1x1xf32>
    %31 = vector.broadcast %30 : f32 to vector<1x1xf32>
    %c0_i32_10 = arith.constant 0 : i32
    %32 = vector.broadcast %c0_i32_10 : i32 to vector<1x16xi32>
    %33 = arith.cmpi eq, %18, %32 : vector<1x16xi32>
    %cst_11 = arith.constant 0.000000e+00 : f32
    %34 = vector.shape_cast %31 : vector<1x1xf32> to vector<1x1xf32>
    %35 = vector.broadcast %34 : vector<1x1xf32> to vector<1x16xf32>
    %36 = vector.broadcast %cst_11 : f32 to vector<1x16xf32>
    %37 = arith.select %33, %35, %36 : vector<1x16xi1>, vector<1x16xf32>
    %38 = arith.addf %19, %37 : vector<1x16xf32>
    %c1_i32 = arith.constant 1 : i32
    %39 = vector.broadcast %c1_i32 : i32 to vector<16x16xi32>
    %40 = arith.cmpi eq, %17, %39 : vector<16x16xi32>
    %c-15_i32 = arith.constant -15 : i32
    %41 = vector.broadcast %c-15_i32 : i32 to vector<16x16xi32>
    %42 = arith.cmpi eq, %17, %41 : vector<16x16xi32>
    %43 = arith.ori %40, %42 : vector<16x16xi1>
    %cst_12 = arith.constant 0.000000e+00 : f32
    %44 = vector.broadcast %cst_12 : f32 to vector<16x16xf32>
    %45 = arith.select %43, %14, %44 : vector<16x16xi1>, vector<16x16xf32>
    %46 = vector.shape_cast %45 : vector<16x16xf32> to vector<1x16x16xf32>
    %cst_13 = arith.constant dense<0.000000e+00> : vector<1xf32>
    %47 = vector.multi_reduction <add>, %46, %cst_13 [1, 2] : vector<1x16x16xf32> to vector<1xf32>
    %48 = vector.shape_cast %47 : vector<1xf32> to vector<1x1x1xf32>
    %49 = vector.extract %48[0, 0, 0] : f32 from vector<1x1x1xf32>
    %50 = vector.broadcast %49 : f32 to vector<1x1xf32>
    %c1_i32_14 = arith.constant 1 : i32
    %51 = vector.broadcast %c1_i32_14 : i32 to vector<1x16xi32>
    %52 = arith.cmpi eq, %18, %51 : vector<1x16xi32>
    %cst_15 = arith.constant 0.000000e+00 : f32
    %53 = vector.shape_cast %50 : vector<1x1xf32> to vector<1x1xf32>
    %54 = vector.broadcast %53 : vector<1x1xf32> to vector<1x16xf32>
    %55 = vector.broadcast %cst_15 : f32 to vector<1x16xf32>
    %56 = arith.select %52, %54, %55 : vector<1x16xi1>, vector<1x16xf32>
    %57 = arith.addf %38, %56 : vector<1x16xf32>
    %c2_i32 = arith.constant 2 : i32
    %58 = vector.broadcast %c2_i32 : i32 to vector<16x16xi32>
    %59 = arith.cmpi eq, %17, %58 : vector<16x16xi32>
    %c-14_i32 = arith.constant -14 : i32
    %60 = vector.broadcast %c-14_i32 : i32 to vector<16x16xi32>
    %61 = arith.cmpi eq, %17, %60 : vector<16x16xi32>
    %62 = arith.ori %59, %61 : vector<16x16xi1>
    %cst_16 = arith.constant 0.000000e+00 : f32
    %63 = vector.broadcast %cst_16 : f32 to vector<16x16xf32>
    %64 = arith.select %62, %14, %63 : vector<16x16xi1>, vector<16x16xf32>
    %65 = vector.shape_cast %64 : vector<16x16xf32> to vector<1x16x16xf32>
    %cst_17 = arith.constant dense<0.000000e+00> : vector<1xf32>
    %66 = vector.multi_reduction <add>, %65, %cst_17 [1, 2] : vector<1x16x16xf32> to vector<1xf32>
    %67 = vector.shape_cast %66 : vector<1xf32> to vector<1x1x1xf32>
    %68 = vector.extract %67[0, 0, 0] : f32 from vector<1x1x1xf32>
    %69 = vector.broadcast %68 : f32 to vector<1x1xf32>
    %c2_i32_18 = arith.constant 2 : i32
    %70 = vector.broadcast %c2_i32_18 : i32 to vector<1x16xi32>
    %71 = arith.cmpi eq, %18, %70 : vector<1x16xi32>
    %cst_19 = arith.constant 0.000000e+00 : f32
    %72 = vector.shape_cast %69 : vector<1x1xf32> to vector<1x1xf32>
    %73 = vector.broadcast %72 : vector<1x1xf32> to vector<1x16xf32>
    %74 = vector.broadcast %cst_19 : f32 to vector<1x16xf32>
    %75 = arith.select %71, %73, %74 : vector<1x16xi1>, vector<1x16xf32>
    %76 = arith.addf %57, %75 : vector<1x16xf32>
    %c3_i32 = arith.constant 3 : i32
    %77 = vector.broadcast %c3_i32 : i32 to vector<16x16xi32>
    %78 = arith.cmpi eq, %17, %77 : vector<16x16xi32>
    %c-13_i32 = arith.constant -13 : i32
    %79 = vector.broadcast %c-13_i32 : i32 to vector<16x16xi32>
    %80 = arith.cmpi eq, %17, %79 : vector<16x16xi32>
    %81 = arith.ori %78, %80 : vector<16x16xi1>
    %cst_20 = arith.constant 0.000000e+00 : f32
    %82 = vector.broadcast %cst_20 : f32 to vector<16x16xf32>
    %83 = arith.select %81, %14, %82 : vector<16x16xi1>, vector<16x16xf32>
    %84 = vector.shape_cast %83 : vector<16x16xf32> to vector<1x16x16xf32>
    %cst_21 = arith.constant dense<0.000000e+00> : vector<1xf32>
    %85 = vector.multi_reduction <add>, %84, %cst_21 [1, 2] : vector<1x16x16xf32> to vector<1xf32>
    %86 = vector.shape_cast %85 : vector<1xf32> to vector<1x1x1xf32>
    %87 = vector.extract %86[0, 0, 0] : f32 from vector<1x1x1xf32>
    %88 = vector.broadcast %87 : f32 to vector<1x1xf32>
    %c3_i32_22 = arith.constant 3 : i32
    %89 = vector.broadcast %c3_i32_22 : i32 to vector<1x16xi32>
    %90 = arith.cmpi eq, %18, %89 : vector<1x16xi32>
    %cst_23 = arith.constant 0.000000e+00 : f32
    %91 = vector.shape_cast %88 : vector<1x1xf32> to vector<1x1xf32>
    %92 = vector.broadcast %91 : vector<1x1xf32> to vector<1x16xf32>
    %93 = vector.broadcast %cst_23 : f32 to vector<1x16xf32>
    %94 = arith.select %90, %92, %93 : vector<1x16xi1>, vector<1x16xf32>
    %95 = arith.addf %76, %94 : vector<1x16xf32>
    %c4_i32 = arith.constant 4 : i32
    %96 = vector.broadcast %c4_i32 : i32 to vector<16x16xi32>
    %97 = arith.cmpi eq, %17, %96 : vector<16x16xi32>
    %c-12_i32 = arith.constant -12 : i32
    %98 = vector.broadcast %c-12_i32 : i32 to vector<16x16xi32>
    %99 = arith.cmpi eq, %17, %98 : vector<16x16xi32>
    %100 = arith.ori %97, %99 : vector<16x16xi1>
    %cst_24 = arith.constant 0.000000e+00 : f32
    %101 = vector.broadcast %cst_24 : f32 to vector<16x16xf32>
    %102 = arith.select %100, %14, %101 : vector<16x16xi1>, vector<16x16xf32>
    %103 = vector.shape_cast %102 : vector<16x16xf32> to vector<1x16x16xf32>
    %cst_25 = arith.constant dense<0.000000e+00> : vector<1xf32>
    %104 = vector.multi_reduction <add>, %103, %cst_25 [1, 2] : vector<1x16x16xf32> to vector<1xf32>
    %105 = vector.shape_cast %104 : vector<1xf32> to vector<1x1x1xf32>
    %106 = vector.extract %105[0, 0, 0] : f32 from vector<1x1x1xf32>
    %107 = vector.broadcast %106 : f32 to vector<1x1xf32>
    %c4_i32_26 = arith.constant 4 : i32
    %108 = vector.broadcast %c4_i32_26 : i32 to vector<1x16xi32>
    %109 = arith.cmpi eq, %18, %108 : vector<1x16xi32>
    %cst_27 = arith.constant 0.000000e+00 : f32
    %110 = vector.shape_cast %107 : vector<1x1xf32> to vector<1x1xf32>
    %111 = vector.broadcast %110 : vector<1x1xf32> to vector<1x16xf32>
    %112 = vector.broadcast %cst_27 : f32 to vector<1x16xf32>
    %113 = arith.select %109, %111, %112 : vector<1x16xi1>, vector<1x16xf32>
    %114 = arith.addf %95, %113 : vector<1x16xf32>
    %c5_i32 = arith.constant 5 : i32
    %115 = vector.broadcast %c5_i32 : i32 to vector<16x16xi32>
    %116 = arith.cmpi eq, %17, %115 : vector<16x16xi32>
    %c-11_i32 = arith.constant -11 : i32
    %117 = vector.broadcast %c-11_i32 : i32 to vector<16x16xi32>
    %118 = arith.cmpi eq, %17, %117 : vector<16x16xi32>
    %119 = arith.ori %116, %118 : vector<16x16xi1>
    %cst_28 = arith.constant 0.000000e+00 : f32
    %120 = vector.broadcast %cst_28 : f32 to vector<16x16xf32>
    %121 = arith.select %119, %14, %120 : vector<16x16xi1>, vector<16x16xf32>
    %122 = vector.shape_cast %121 : vector<16x16xf32> to vector<1x16x16xf32>
    %cst_29 = arith.constant dense<0.000000e+00> : vector<1xf32>
    %123 = vector.multi_reduction <add>, %122, %cst_29 [1, 2] : vector<1x16x16xf32> to vector<1xf32>
    %124 = vector.shape_cast %123 : vector<1xf32> to vector<1x1x1xf32>
    %125 = vector.extract %124[0, 0, 0] : f32 from vector<1x1x1xf32>
    %126 = vector.broadcast %125 : f32 to vector<1x1xf32>
    %c5_i32_30 = arith.constant 5 : i32
    %127 = vector.broadcast %c5_i32_30 : i32 to vector<1x16xi32>
    %128 = arith.cmpi eq, %18, %127 : vector<1x16xi32>
    %cst_31 = arith.constant 0.000000e+00 : f32
    %129 = vector.shape_cast %126 : vector<1x1xf32> to vector<1x1xf32>
    %130 = vector.broadcast %129 : vector<1x1xf32> to vector<1x16xf32>
    %131 = vector.broadcast %cst_31 : f32 to vector<1x16xf32>
    %132 = arith.select %128, %130, %131 : vector<1x16xi1>, vector<1x16xf32>
    %133 = arith.addf %114, %132 : vector<1x16xf32>
    %c6_i32 = arith.constant 6 : i32
    %134 = vector.broadcast %c6_i32 : i32 to vector<16x16xi32>
    %135 = arith.cmpi eq, %17, %134 : vector<16x16xi32>
    %c-10_i32 = arith.constant -10 : i32
    %136 = vector.broadcast %c-10_i32 : i32 to vector<16x16xi32>
    %137 = arith.cmpi eq, %17, %136 : vector<16x16xi32>
    %138 = arith.ori %135, %137 : vector<16x16xi1>
    %cst_32 = arith.constant 0.000000e+00 : f32
    %139 = vector.broadcast %cst_32 : f32 to vector<16x16xf32>
    %140 = arith.select %138, %14, %139 : vector<16x16xi1>, vector<16x16xf32>
    %141 = vector.shape_cast %140 : vector<16x16xf32> to vector<1x16x16xf32>
    %cst_33 = arith.constant dense<0.000000e+00> : vector<1xf32>
    %142 = vector.multi_reduction <add>, %141, %cst_33 [1, 2] : vector<1x16x16xf32> to vector<1xf32>
    %143 = vector.shape_cast %142 : vector<1xf32> to vector<1x1x1xf32>
    %144 = vector.extract %143[0, 0, 0] : f32 from vector<1x1x1xf32>
    %145 = vector.broadcast %144 : f32 to vector<1x1xf32>
    %c6_i32_34 = arith.constant 6 : i32
    %146 = vector.broadcast %c6_i32_34 : i32 to vector<1x16xi32>
    %147 = arith.cmpi eq, %18, %146 : vector<1x16xi32>
    %cst_35 = arith.constant 0.000000e+00 : f32
    %148 = vector.shape_cast %145 : vector<1x1xf32> to vector<1x1xf32>
    %149 = vector.broadcast %148 : vector<1x1xf32> to vector<1x16xf32>
    %150 = vector.broadcast %cst_35 : f32 to vector<1x16xf32>
    %151 = arith.select %147, %149, %150 : vector<1x16xi1>, vector<1x16xf32>
    %152 = arith.addf %133, %151 : vector<1x16xf32>
    %c7_i32 = arith.constant 7 : i32
    %153 = vector.broadcast %c7_i32 : i32 to vector<16x16xi32>
    %154 = arith.cmpi eq, %17, %153 : vector<16x16xi32>
    %c-9_i32 = arith.constant -9 : i32
    %155 = vector.broadcast %c-9_i32 : i32 to vector<16x16xi32>
    %156 = arith.cmpi eq, %17, %155 : vector<16x16xi32>
    %157 = arith.ori %154, %156 : vector<16x16xi1>
    %cst_36 = arith.constant 0.000000e+00 : f32
    %158 = vector.broadcast %cst_36 : f32 to vector<16x16xf32>
    %159 = arith.select %157, %14, %158 : vector<16x16xi1>, vector<16x16xf32>
    %160 = vector.shape_cast %159 : vector<16x16xf32> to vector<1x16x16xf32>
    %cst_37 = arith.constant dense<0.000000e+00> : vector<1xf32>
    %161 = vector.multi_reduction <add>, %160, %cst_37 [1, 2] : vector<1x16x16xf32> to vector<1xf32>
    %162 = vector.shape_cast %161 : vector<1xf32> to vector<1x1x1xf32>
    %163 = vector.extract %162[0, 0, 0] : f32 from vector<1x1x1xf32>
    %164 = vector.broadcast %163 : f32 to vector<1x1xf32>
    %c7_i32_38 = arith.constant 7 : i32
    %165 = vector.broadcast %c7_i32_38 : i32 to vector<1x16xi32>
    %166 = arith.cmpi eq, %18, %165 : vector<1x16xi32>
    %cst_39 = arith.constant 0.000000e+00 : f32
    %167 = vector.shape_cast %164 : vector<1x1xf32> to vector<1x1xf32>
    %168 = vector.broadcast %167 : vector<1x1xf32> to vector<1x16xf32>
    %169 = vector.broadcast %cst_39 : f32 to vector<1x16xf32>
    %170 = arith.select %166, %168, %169 : vector<1x16xi1>, vector<1x16xf32>
    %171 = arith.addf %152, %170 : vector<1x16xf32>
    %c8_i32 = arith.constant 8 : i32
    %172 = vector.broadcast %c8_i32 : i32 to vector<16x16xi32>
    %173 = arith.cmpi eq, %17, %172 : vector<16x16xi32>
    %c-8_i32 = arith.constant -8 : i32
    %174 = vector.broadcast %c-8_i32 : i32 to vector<16x16xi32>
    %175 = arith.cmpi eq, %17, %174 : vector<16x16xi32>
    %176 = arith.ori %173, %175 : vector<16x16xi1>
    %cst_40 = arith.constant 0.000000e+00 : f32
    %177 = vector.broadcast %cst_40 : f32 to vector<16x16xf32>
    %178 = arith.select %176, %14, %177 : vector<16x16xi1>, vector<16x16xf32>
    %179 = vector.shape_cast %178 : vector<16x16xf32> to vector<1x16x16xf32>
    %cst_41 = arith.constant dense<0.000000e+00> : vector<1xf32>
    %180 = vector.multi_reduction <add>, %179, %cst_41 [1, 2] : vector<1x16x16xf32> to vector<1xf32>
    %181 = vector.shape_cast %180 : vector<1xf32> to vector<1x1x1xf32>
    %182 = vector.extract %181[0, 0, 0] : f32 from vector<1x1x1xf32>
    %183 = vector.broadcast %182 : f32 to vector<1x1xf32>
    %c8_i32_42 = arith.constant 8 : i32
    %184 = vector.broadcast %c8_i32_42 : i32 to vector<1x16xi32>
    %185 = arith.cmpi eq, %18, %184 : vector<1x16xi32>
    %cst_43 = arith.constant 0.000000e+00 : f32
    %186 = vector.shape_cast %183 : vector<1x1xf32> to vector<1x1xf32>
    %187 = vector.broadcast %186 : vector<1x1xf32> to vector<1x16xf32>
    %188 = vector.broadcast %cst_43 : f32 to vector<1x16xf32>
    %189 = arith.select %185, %187, %188 : vector<1x16xi1>, vector<1x16xf32>
    %190 = arith.addf %171, %189 : vector<1x16xf32>
    %c9_i32 = arith.constant 9 : i32
    %191 = vector.broadcast %c9_i32 : i32 to vector<16x16xi32>
    %192 = arith.cmpi eq, %17, %191 : vector<16x16xi32>
    %c-7_i32 = arith.constant -7 : i32
    %193 = vector.broadcast %c-7_i32 : i32 to vector<16x16xi32>
    %194 = arith.cmpi eq, %17, %193 : vector<16x16xi32>
    %195 = arith.ori %192, %194 : vector<16x16xi1>
    %cst_44 = arith.constant 0.000000e+00 : f32
    %196 = vector.broadcast %cst_44 : f32 to vector<16x16xf32>
    %197 = arith.select %195, %14, %196 : vector<16x16xi1>, vector<16x16xf32>
    %198 = vector.shape_cast %197 : vector<16x16xf32> to vector<1x16x16xf32>
    %cst_45 = arith.constant dense<0.000000e+00> : vector<1xf32>
    %199 = vector.multi_reduction <add>, %198, %cst_45 [1, 2] : vector<1x16x16xf32> to vector<1xf32>
    %200 = vector.shape_cast %199 : vector<1xf32> to vector<1x1x1xf32>
    %201 = vector.extract %200[0, 0, 0] : f32 from vector<1x1x1xf32>
    %202 = vector.broadcast %201 : f32 to vector<1x1xf32>
    %c9_i32_46 = arith.constant 9 : i32
    %203 = vector.broadcast %c9_i32_46 : i32 to vector<1x16xi32>
    %204 = arith.cmpi eq, %18, %203 : vector<1x16xi32>
    %cst_47 = arith.constant 0.000000e+00 : f32
    %205 = vector.shape_cast %202 : vector<1x1xf32> to vector<1x1xf32>
    %206 = vector.broadcast %205 : vector<1x1xf32> to vector<1x16xf32>
    %207 = vector.broadcast %cst_47 : f32 to vector<1x16xf32>
    %208 = arith.select %204, %206, %207 : vector<1x16xi1>, vector<1x16xf32>
    %209 = arith.addf %190, %208 : vector<1x16xf32>
    %c10_i32 = arith.constant 10 : i32
    %210 = vector.broadcast %c10_i32 : i32 to vector<16x16xi32>
    %211 = arith.cmpi eq, %17, %210 : vector<16x16xi32>
    %c-6_i32 = arith.constant -6 : i32
    %212 = vector.broadcast %c-6_i32 : i32 to vector<16x16xi32>
    %213 = arith.cmpi eq, %17, %212 : vector<16x16xi32>
    %214 = arith.ori %211, %213 : vector<16x16xi1>
    %cst_48 = arith.constant 0.000000e+00 : f32
    %215 = vector.broadcast %cst_48 : f32 to vector<16x16xf32>
    %216 = arith.select %214, %14, %215 : vector<16x16xi1>, vector<16x16xf32>
    %217 = vector.shape_cast %216 : vector<16x16xf32> to vector<1x16x16xf32>
    %cst_49 = arith.constant dense<0.000000e+00> : vector<1xf32>
    %218 = vector.multi_reduction <add>, %217, %cst_49 [1, 2] : vector<1x16x16xf32> to vector<1xf32>
    %219 = vector.shape_cast %218 : vector<1xf32> to vector<1x1x1xf32>
    %220 = vector.extract %219[0, 0, 0] : f32 from vector<1x1x1xf32>
    %221 = vector.broadcast %220 : f32 to vector<1x1xf32>
    %c10_i32_50 = arith.constant 10 : i32
    %222 = vector.broadcast %c10_i32_50 : i32 to vector<1x16xi32>
    %223 = arith.cmpi eq, %18, %222 : vector<1x16xi32>
    %cst_51 = arith.constant 0.000000e+00 : f32
    %224 = vector.shape_cast %221 : vector<1x1xf32> to vector<1x1xf32>
    %225 = vector.broadcast %224 : vector<1x1xf32> to vector<1x16xf32>
    %226 = vector.broadcast %cst_51 : f32 to vector<1x16xf32>
    %227 = arith.select %223, %225, %226 : vector<1x16xi1>, vector<1x16xf32>
    %228 = arith.addf %209, %227 : vector<1x16xf32>
    %c11_i32 = arith.constant 11 : i32
    %229 = vector.broadcast %c11_i32 : i32 to vector<16x16xi32>
    %230 = arith.cmpi eq, %17, %229 : vector<16x16xi32>
    %c-5_i32 = arith.constant -5 : i32
    %231 = vector.broadcast %c-5_i32 : i32 to vector<16x16xi32>
    %232 = arith.cmpi eq, %17, %231 : vector<16x16xi32>
    %233 = arith.ori %230, %232 : vector<16x16xi1>
    %cst_52 = arith.constant 0.000000e+00 : f32
    %234 = vector.broadcast %cst_52 : f32 to vector<16x16xf32>
    %235 = arith.select %233, %14, %234 : vector<16x16xi1>, vector<16x16xf32>
    %236 = vector.shape_cast %235 : vector<16x16xf32> to vector<1x16x16xf32>
    %cst_53 = arith.constant dense<0.000000e+00> : vector<1xf32>
    %237 = vector.multi_reduction <add>, %236, %cst_53 [1, 2] : vector<1x16x16xf32> to vector<1xf32>
    %238 = vector.shape_cast %237 : vector<1xf32> to vector<1x1x1xf32>
    %239 = vector.extract %238[0, 0, 0] : f32 from vector<1x1x1xf32>
    %240 = vector.broadcast %239 : f32 to vector<1x1xf32>
    %c11_i32_54 = arith.constant 11 : i32
    %241 = vector.broadcast %c11_i32_54 : i32 to vector<1x16xi32>
    %242 = arith.cmpi eq, %18, %241 : vector<1x16xi32>
    %cst_55 = arith.constant 0.000000e+00 : f32
    %243 = vector.shape_cast %240 : vector<1x1xf32> to vector<1x1xf32>
    %244 = vector.broadcast %243 : vector<1x1xf32> to vector<1x16xf32>
    %245 = vector.broadcast %cst_55 : f32 to vector<1x16xf32>
    %246 = arith.select %242, %244, %245 : vector<1x16xi1>, vector<1x16xf32>
    %247 = arith.addf %228, %246 : vector<1x16xf32>
    %c12_i32 = arith.constant 12 : i32
    %248 = vector.broadcast %c12_i32 : i32 to vector<16x16xi32>
    %249 = arith.cmpi eq, %17, %248 : vector<16x16xi32>
    %c-4_i32 = arith.constant -4 : i32
    %250 = vector.broadcast %c-4_i32 : i32 to vector<16x16xi32>
    %251 = arith.cmpi eq, %17, %250 : vector<16x16xi32>
    %252 = arith.ori %249, %251 : vector<16x16xi1>
    %cst_56 = arith.constant 0.000000e+00 : f32
    %253 = vector.broadcast %cst_56 : f32 to vector<16x16xf32>
    %254 = arith.select %252, %14, %253 : vector<16x16xi1>, vector<16x16xf32>
    %255 = vector.shape_cast %254 : vector<16x16xf32> to vector<1x16x16xf32>
    %cst_57 = arith.constant dense<0.000000e+00> : vector<1xf32>
    %256 = vector.multi_reduction <add>, %255, %cst_57 [1, 2] : vector<1x16x16xf32> to vector<1xf32>
    %257 = vector.shape_cast %256 : vector<1xf32> to vector<1x1x1xf32>
    %258 = vector.extract %257[0, 0, 0] : f32 from vector<1x1x1xf32>
    %259 = vector.broadcast %258 : f32 to vector<1x1xf32>
    %c12_i32_58 = arith.constant 12 : i32
    %260 = vector.broadcast %c12_i32_58 : i32 to vector<1x16xi32>
    %261 = arith.cmpi eq, %18, %260 : vector<1x16xi32>
    %cst_59 = arith.constant 0.000000e+00 : f32
    %262 = vector.shape_cast %259 : vector<1x1xf32> to vector<1x1xf32>
    %263 = vector.broadcast %262 : vector<1x1xf32> to vector<1x16xf32>
    %264 = vector.broadcast %cst_59 : f32 to vector<1x16xf32>
    %265 = arith.select %261, %263, %264 : vector<1x16xi1>, vector<1x16xf32>
    %266 = arith.addf %247, %265 : vector<1x16xf32>
    %c13_i32 = arith.constant 13 : i32
    %267 = vector.broadcast %c13_i32 : i32 to vector<16x16xi32>
    %268 = arith.cmpi eq, %17, %267 : vector<16x16xi32>
    %c-3_i32 = arith.constant -3 : i32
    %269 = vector.broadcast %c-3_i32 : i32 to vector<16x16xi32>
    %270 = arith.cmpi eq, %17, %269 : vector<16x16xi32>
    %271 = arith.ori %268, %270 : vector<16x16xi1>
    %cst_60 = arith.constant 0.000000e+00 : f32
    %272 = vector.broadcast %cst_60 : f32 to vector<16x16xf32>
    %273 = arith.select %271, %14, %272 : vector<16x16xi1>, vector<16x16xf32>
    %274 = vector.shape_cast %273 : vector<16x16xf32> to vector<1x16x16xf32>
    %cst_61 = arith.constant dense<0.000000e+00> : vector<1xf32>
    %275 = vector.multi_reduction <add>, %274, %cst_61 [1, 2] : vector<1x16x16xf32> to vector<1xf32>
    %276 = vector.shape_cast %275 : vector<1xf32> to vector<1x1x1xf32>
    %277 = vector.extract %276[0, 0, 0] : f32 from vector<1x1x1xf32>
    %278 = vector.broadcast %277 : f32 to vector<1x1xf32>
    %c13_i32_62 = arith.constant 13 : i32
    %279 = vector.broadcast %c13_i32_62 : i32 to vector<1x16xi32>
    %280 = arith.cmpi eq, %18, %279 : vector<1x16xi32>
    %cst_63 = arith.constant 0.000000e+00 : f32
    %281 = vector.shape_cast %278 : vector<1x1xf32> to vector<1x1xf32>
    %282 = vector.broadcast %281 : vector<1x1xf32> to vector<1x16xf32>
    %283 = vector.broadcast %cst_63 : f32 to vector<1x16xf32>
    %284 = arith.select %280, %282, %283 : vector<1x16xi1>, vector<1x16xf32>
    %285 = arith.addf %266, %284 : vector<1x16xf32>
    %c14_i32 = arith.constant 14 : i32
    %286 = vector.broadcast %c14_i32 : i32 to vector<16x16xi32>
    %287 = arith.cmpi eq, %17, %286 : vector<16x16xi32>
    %c-2_i32 = arith.constant -2 : i32
    %288 = vector.broadcast %c-2_i32 : i32 to vector<16x16xi32>
    %289 = arith.cmpi eq, %17, %288 : vector<16x16xi32>
    %290 = arith.ori %287, %289 : vector<16x16xi1>
    %cst_64 = arith.constant 0.000000e+00 : f32
    %291 = vector.broadcast %cst_64 : f32 to vector<16x16xf32>
    %292 = arith.select %290, %14, %291 : vector<16x16xi1>, vector<16x16xf32>
    %293 = vector.shape_cast %292 : vector<16x16xf32> to vector<1x16x16xf32>
    %cst_65 = arith.constant dense<0.000000e+00> : vector<1xf32>
    %294 = vector.multi_reduction <add>, %293, %cst_65 [1, 2] : vector<1x16x16xf32> to vector<1xf32>
    %295 = vector.shape_cast %294 : vector<1xf32> to vector<1x1x1xf32>
    %296 = vector.extract %295[0, 0, 0] : f32 from vector<1x1x1xf32>
    %297 = vector.broadcast %296 : f32 to vector<1x1xf32>
    %c14_i32_66 = arith.constant 14 : i32
    %298 = vector.broadcast %c14_i32_66 : i32 to vector<1x16xi32>
    %299 = arith.cmpi eq, %18, %298 : vector<1x16xi32>
    %cst_67 = arith.constant 0.000000e+00 : f32
    %300 = vector.shape_cast %297 : vector<1x1xf32> to vector<1x1xf32>
    %301 = vector.broadcast %300 : vector<1x1xf32> to vector<1x16xf32>
    %302 = vector.broadcast %cst_67 : f32 to vector<1x16xf32>
    %303 = arith.select %299, %301, %302 : vector<1x16xi1>, vector<1x16xf32>
    %304 = arith.addf %285, %303 : vector<1x16xf32>
    %c15_i32 = arith.constant 15 : i32
    %305 = vector.broadcast %c15_i32 : i32 to vector<16x16xi32>
    %306 = arith.cmpi eq, %17, %305 : vector<16x16xi32>
    %c-1_i32 = arith.constant -1 : i32
    %307 = vector.broadcast %c-1_i32 : i32 to vector<16x16xi32>
    %308 = arith.cmpi eq, %17, %307 : vector<16x16xi32>
    %309 = arith.ori %306, %308 : vector<16x16xi1>
    %cst_68 = arith.constant 0.000000e+00 : f32
    %310 = vector.broadcast %cst_68 : f32 to vector<16x16xf32>
    %311 = arith.select %309, %14, %310 : vector<16x16xi1>, vector<16x16xf32>
    %312 = vector.shape_cast %311 : vector<16x16xf32> to vector<1x16x16xf32>
    %cst_69 = arith.constant dense<0.000000e+00> : vector<1xf32>
    %313 = vector.multi_reduction <add>, %312, %cst_69 [1, 2] : vector<1x16x16xf32> to vector<1xf32>
    %314 = vector.shape_cast %313 : vector<1xf32> to vector<1x1x1xf32>
    %315 = vector.extract %314[0, 0, 0] : f32 from vector<1x1x1xf32>
    %316 = vector.broadcast %315 : f32 to vector<1x1xf32>
    %c15_i32_70 = arith.constant 15 : i32
    %317 = vector.broadcast %c15_i32_70 : i32 to vector<1x16xi32>
    %318 = arith.cmpi eq, %18, %317 : vector<1x16xi32>
    %cst_71 = arith.constant 0.000000e+00 : f32
    %319 = vector.shape_cast %316 : vector<1x1xf32> to vector<1x1xf32>
    %320 = vector.broadcast %319 : vector<1x1xf32> to vector<1x16xf32>
    %321 = vector.broadcast %cst_71 : f32 to vector<1x16xf32>
    %322 = arith.select %318, %320, %321 : vector<1x16xi1>, vector<1x16xf32>
    %323 = arith.addf %304, %322 : vector<1x16xf32>
    %cst_72 = arith.constant 7.812500e-03 : f32
    %324 = vector.broadcast %cst_72 : f32 to vector<1x16xf32>
    %325 = arith.mulf %323, %324 : vector<1x16xf32>
    %326 = vector.shape_cast %325 : vector<1x16xf32> to vector<1x1x16xf32>
    %cst_73 = arith.constant dense<0xFF800000> : vector<1xf32>
    %327 = vector.multi_reduction <maximumf>, %326, %cst_73 [1, 2] : vector<1x1x16xf32> to vector<1xf32>
    %328 = vector.shape_cast %327 : vector<1xf32> to vector<1x1x1xf32>
    %329 = vector.extract %328[0, 0, 0] : f32 from vector<1x1x1xf32>
    %330 = vector.broadcast %329 : f32 to vector<1x1xf32>
    %331 = vector.broadcast %330 : vector<1x1xf32> to vector<1x16xf32>
    %332 = arith.cmpf oeq, %325, %331 : vector<1x16xf32>
    %c16_i32 = arith.constant 16 : i32
    %333 = vector.broadcast %c16_i32 : i32 to vector<1x16xi32>
    %334 = arith.select %332, %18, %333 : vector<1x16xi1>, vector<1x16xi32>
    %335 = vector.shape_cast %334 : vector<1x16xi32> to vector<1x1x16xi32>
    %cst_74 = arith.constant dense<2147483647> : vector<1xi32>
    %336 = vector.multi_reduction <minsi>, %335, %cst_74 [1, 2] : vector<1x1x16xi32> to vector<1xi32>
    %337 = vector.shape_cast %336 : vector<1xi32> to vector<1x1x1xi32>
    %338 = vector.extract %337[0, 0, 0] : i32 from vector<1x1x1xi32>
    %339 = vector.broadcast %338 : i32 to vector<1x1xi32>
    %340 = vector.broadcast %339 : vector<1x1xi32> to vector<1x16xi32>
    %341 = arith.cmpi eq, %18, %340 : vector<1x16xi32>
    %cst_75 = arith.constant -1.000000e+30 : f32
    %342 = vector.broadcast %cst_75 : f32 to vector<1x16xf32>
    %343 = arith.select %341, %342, %325 : vector<1x16xi1>, vector<1x16xf32>
    %344 = vector.shape_cast %343 : vector<1x16xf32> to vector<1x1x16xf32>
    %cst_76 = arith.constant dense<0xFF800000> : vector<1xf32>
    %345 = vector.multi_reduction <maximumf>, %344, %cst_76 [1, 2] : vector<1x1x16xf32> to vector<1xf32>
    %346 = vector.shape_cast %345 : vector<1xf32> to vector<1x1x1xf32>
    %347 = vector.extract %346[0, 0, 0] : f32 from vector<1x1x1xf32>
    %348 = vector.broadcast %347 : f32 to vector<1x1xf32>
    %349 = vector.broadcast %348 : vector<1x1xf32> to vector<1x16xf32>
    %350 = arith.cmpf oeq, %343, %349 : vector<1x16xf32>
    %c16_i32_77 = arith.constant 16 : i32
    %351 = vector.broadcast %c16_i32_77 : i32 to vector<1x16xi32>
    %352 = arith.select %350, %18, %351 : vector<1x16xi1>, vector<1x16xi32>
    %353 = vector.shape_cast %352 : vector<1x16xi32> to vector<1x1x16xi32>
    %cst_78 = arith.constant dense<2147483647> : vector<1xi32>
    %354 = vector.multi_reduction <minsi>, %353, %cst_78 [1, 2] : vector<1x1x16xi32> to vector<1xi32>
    %355 = vector.shape_cast %354 : vector<1xi32> to vector<1x1x1xi32>
    %356 = vector.extract %355[0, 0, 0] : i32 from vector<1x1x1xi32>
    %357 = vector.broadcast %356 : i32 to vector<1x1xi32>
    %358 = arith.subf %330, %330 : vector<1x1xf32>
    %359 = math.exp %358 : vector<1x1xf32>
    %360 = arith.subf %348, %330 : vector<1x1xf32>
    %361 = math.exp %360 : vector<1x1xf32>
    %362 = arith.addf %359, %361 : vector<1x1xf32>
    %363 = tpu.reciprocal %362 {approx = true} : vector<1x1xf32> -> vector<1x1xf32>
    %364 = arith.mulf %359, %363 : vector<1x1xf32>
    %365 = arith.mulf %361, %363 : vector<1x1xf32>
    %366 = arith.subi %16, %15 : vector<16x16xi32>
    %cst_79 = arith.constant 0.000000e+00 : f32
    %367 = vector.broadcast %cst_79 : f32 to vector<16x16xf32>
    %368 = vector.broadcast %339 : vector<1x1xi32> to vector<16x16xi32>
    %369 = arith.cmpi eq, %366, %368 : vector<16x16xi32>
    %c16_i32_80 = arith.constant 16 : i32
    %370 = vector.broadcast %c16_i32_80 : i32 to vector<1x1xi32>
    %371 = arith.subi %339, %370 : vector<1x1xi32>
    %372 = vector.broadcast %371 : vector<1x1xi32> to vector<16x16xi32>
    %373 = arith.cmpi eq, %366, %372 : vector<16x16xi32>
    %374 = arith.ori %369, %373 : vector<16x16xi1>
    %375 = arith.extui %374 : vector<16x16xi1> to vector<16x16xi32>
    %376 = arith.sitofp %375 : vector<16x16xi32> to vector<16x16xf32>
    %377 = vector.broadcast %364 : vector<1x1xf32> to vector<16x16xf32>
    %378 = arith.mulf %377, %376 : vector<16x16xf32>
    %379 = arith.addf %367, %378 : vector<16x16xf32>
    %380 = vector.broadcast %357 : vector<1x1xi32> to vector<16x16xi32>
    %381 = arith.cmpi eq, %366, %380 : vector<16x16xi32>
    %c16_i32_81 = arith.constant 16 : i32
    %382 = vector.broadcast %c16_i32_81 : i32 to vector<1x1xi32>
    %383 = arith.subi %357, %382 : vector<1x1xi32>
    %384 = vector.broadcast %383 : vector<1x1xi32> to vector<16x16xi32>
    %385 = arith.cmpi eq, %366, %384 : vector<16x16xi32>
    %386 = arith.ori %381, %385 : vector<16x16xi1>
    %387 = arith.extui %386 : vector<16x16xi1> to vector<16x16xi32>
    %388 = arith.sitofp %387 : vector<16x16xi32> to vector<16x16xf32>
    %389 = vector.broadcast %365 : vector<1x1xf32> to vector<16x16xf32>
    %390 = arith.mulf %389, %388 : vector<16x16xf32>
    %391 = arith.addf %379, %390 : vector<16x16xf32>
    %392 = arith.truncf %391 : vector<16x16xf32> to vector<16x16xbf16>
    %393 = arith.truncf %11 : vector<16x128xf32> to vector<16x128xbf16>
    %cst_82 = arith.constant dense<0.000000e+00> : vector<16x128xf32>
    %394 = tpu.matmul %392, %393, %cst_82 {dimension_numbers = #tpu.dot_dimension_numbers<[1], [0], [0], [1], [0, 0, 1, 1], [], []>} : vector<16x16xbf16>, vector<16x128xbf16>, vector<16x128xf32> -> vector<16x128xf32>
    %395 = arith.truncf %394 : vector<16x128xf32> to vector<16x128xbf16>
    %c0_83 = arith.constant 0 : index
    %c0_84 = arith.constant 0 : index
    %396 = vector.load %arg4[%c0_83, %c0_84] : memref<128x128xf32, #tpu.memory_space<vmem>>, vector<128x128xf32>
    %397 = arith.truncf %396 : vector<128x128xf32> to vector<128x128xbf16>
    %cst_85 = arith.constant dense<0.000000e+00> : vector<16x128xf32>
    %398 = tpu.matmul %395, %397, %cst_85 {dimension_numbers = #tpu.dot_dimension_numbers<[1], [0], [0], [1], [0, 0, 1, 1], [], []>} : vector<16x128xbf16>, vector<128x128xbf16>, vector<16x128xf32> -> vector<16x128xf32>
    %c0_86 = arith.constant 0 : index
    %c0_87 = arith.constant 0 : index
    %399 = vector.load %arg5[%c0_86, %c0_87] : memref<1x128xf32, #tpu.memory_space<vmem>>, vector<1x128xf32>
    %400 = vector.broadcast %399 : vector<1x128xf32> to vector<16x128xf32>
    %401 = arith.addf %398, %400 : vector<16x128xf32>
    %402 = arith.addf %1, %401 : vector<16x128xf32>
    %c0_88 = arith.constant 0 : index
    %c0_89 = arith.constant 0 : index
    %403 = vector.load %arg8[%c0_88, %c0_89] : memref<16x16xf32, #tpu.memory_space<vmem>>, vector<16x16xf32>
    %cst_90 = arith.constant dense<0.000000e+00> : vector<16x128xf32>
    %404 = tpu.matmul %403, %402, %cst_90 {dimension_numbers = #tpu.dot_dimension_numbers<[1], [0], [0], [1], [0, 0, 1, 1], [], []>} : vector<16x16xf32>, vector<16x128xf32>, vector<16x128xf32> -> vector<16x128xf32>
    %405 = arith.subf %402, %404 : vector<16x128xf32>
    %406 = arith.truncf %405 : vector<16x128xf32> to vector<16x128xbf16>
    %c0_91 = arith.constant 0 : index
    %c0_92 = arith.constant 0 : index
    %407 = vector.load %arg6[%c0_91, %c0_92] : memref<128x512xf32, #tpu.memory_space<vmem>>, vector<128x512xf32>
    %408 = arith.truncf %407 : vector<128x512xf32> to vector<128x512xbf16>
    %cst_93 = arith.constant dense<0.000000e+00> : vector<16x512xf32>
    %409 = tpu.matmul %406, %408, %cst_93 {dimension_numbers = #tpu.dot_dimension_numbers<[1], [0], [0], [1], [0, 0, 1, 1], [], []>} : vector<16x128xbf16>, vector<128x512xbf16>, vector<16x512xf32> -> vector<16x512xf32>
    %cst_94 = arith.constant 0.000000e+00 : f32
    %410 = vector.broadcast %cst_94 : f32 to vector<16x512xf32>
    %411 = arith.maximumf %409, %410 : vector<16x512xf32>
    %412 = arith.truncf %411 : vector<16x512xf32> to vector<16x512xbf16>
    %c0_95 = arith.constant 0 : index
    %c0_96 = arith.constant 0 : index
    %413 = vector.load %arg7[%c0_95, %c0_96] : memref<512x128xf32, #tpu.memory_space<vmem>>, vector<512x128xf32>
    %414 = arith.truncf %413 : vector<512x128xf32> to vector<512x128xbf16>
    %cst_97 = arith.constant dense<0.000000e+00> : vector<16x128xf32>
    %415 = tpu.matmul %412, %414, %cst_97 {dimension_numbers = #tpu.dot_dimension_numbers<[1], [0], [0], [1], [0, 0, 1, 1], [], []>} : vector<16x512xbf16>, vector<512x128xbf16>, vector<16x128xf32> -> vector<16x128xf32>
    %416 = arith.addf %405, %415 : vector<16x128xf32>
    %c0_98 = arith.constant 0 : index
    %c0_99 = arith.constant 0 : index
    %417 = vector.load %arg8[%c0_98, %c0_99] : memref<16x16xf32, #tpu.memory_space<vmem>>, vector<16x16xf32>
    %cst_100 = arith.constant dense<0.000000e+00> : vector<16x128xf32>
    %418 = tpu.matmul %417, %416, %cst_100 {dimension_numbers = #tpu.dot_dimension_numbers<[1], [0], [0], [1], [0, 0, 1, 1], [], []>} : vector<16x16xf32>, vector<16x128xf32>, vector<16x128xf32> -> vector<16x128xf32>
    %419 = arith.subf %416, %418 : vector<16x128xf32>
    %c0_101 = arith.constant 0 : index
    %c0_102 = arith.constant 0 : index
    %c0_103 = arith.constant 0 : index
    %420 = vector.load %arg9[%c0_101, %c0_102, %c0_103] : memref<1x16x128xf32, #tpu.memory_space<vmem>>, vector<1x16x128xf32>
    %421 = vector.shape_cast %420 : vector<1x16x128xf32> to vector<16x128xf32>
    %422 = vector.shape_cast %419 : vector<16x128xf32> to vector<1x16x128xf32>
    tpu.vector_store %arg9[%c0_101, %c0_102, %c0_103], %422 {strides = array<i32>} : memref<1x16x128xf32, #tpu.memory_space<vmem>>, vector<1x16x128xf32>,
    %c0_104 = arith.constant 0 : index
    %c0_105 = arith.constant 0 : index
    %c0_106 = arith.constant 0 : index
    %423 = vector.load %arg10[%c0_104, %c0_105, %c0_106] : memref<1x1x16xf32, #tpu.memory_space<vmem>>, vector<1x1x16xf32>
    %424 = vector.shape_cast %423 : vector<1x1x16xf32> to vector<1x16xf32>
    %425 = vector.shape_cast %325 : vector<1x16xf32> to vector<1x1x16xf32>
    tpu.vector_store %arg10[%c0_104, %c0_105, %c0_106], %425 {strides = array<i32>} : memref<1x1x16xf32, #tpu.memory_space<vmem>>, vector<1x1x16xf32>,
    return
  }
  func.func @transform_0(%arg0: i32) -> (i32, i32, i32) {
    %c0_i32 = arith.constant 0 : i32
    %c0_i32_0 = arith.constant 0 : i32
    %c0_i32_1 = arith.constant 0 : i32
    return %arg0, %c0_i32, %c0_i32_0 : i32, i32, i32
  }
  func.func @transform_1(%arg0: i32) -> (i32, i32) {
    %c0_i32 = arith.constant 0 : i32
    %c0_i32_0 = arith.constant 0 : i32
    %c0_i32_1 = arith.constant 0 : i32
    return %c0_i32, %c0_i32_0 : i32, i32
  }
  func.func @transform_2(%arg0: i32) -> (i32, i32) {
    %c0_i32 = arith.constant 0 : i32
    %c0_i32_0 = arith.constant 0 : i32
    %c0_i32_1 = arith.constant 0 : i32
    return %c0_i32, %c0_i32_0 : i32, i32
  }
  func.func @transform_3(%arg0: i32) -> (i32, i32) {
    %c0_i32 = arith.constant 0 : i32
    %c0_i32_0 = arith.constant 0 : i32
    %c0_i32_1 = arith.constant 0 : i32
    return %c0_i32, %c0_i32_0 : i32, i32
  }
  func.func @transform_4(%arg0: i32) -> (i32, i32) {
    %c0_i32 = arith.constant 0 : i32
    %c0_i32_0 = arith.constant 0 : i32
    %c0_i32_1 = arith.constant 0 : i32
    return %c0_i32, %c0_i32_0 : i32, i32
  }
  func.func @transform_5(%arg0: i32) -> (i32, i32) {
    %c0_i32 = arith.constant 0 : i32
    %c0_i32_0 = arith.constant 0 : i32
    %c0_i32_1 = arith.constant 0 : i32
    return %c0_i32, %c0_i32_0 : i32, i32
  }
  func.func @transform_6(%arg0: i32) -> (i32, i32) {
    %c0_i32 = arith.constant 0 : i32
    %c0_i32_0 = arith.constant 0 : i32
    %c0_i32_1 = arith.constant 0 : i32
    return %c0_i32, %c0_i32_0 : i32, i32
  }
  func.func @transform_7(%arg0: i32) -> (i32, i32) {
    %c0_i32 = arith.constant 0 : i32
    %c0_i32_0 = arith.constant 0 : i32
    %c0_i32_1 = arith.constant 0 : i32
    return %c0_i32, %c0_i32_0 : i32, i32
  }
  func.func @transform_8(%arg0: i32) -> (i32, i32, i32) {
    %c0_i32 = arith.constant 0 : i32
    %c0_i32_0 = arith.constant 0 : i32
    %c0_i32_1 = arith.constant 0 : i32
    return %arg0, %c0_i32, %c0_i32_0 : i32, i32, i32
  }
  func.func @transform_9(%arg0: i32) -> (i32, i32, i32) {
    %c0_i32 = arith.constant 0 : i32
    %c0_i32_0 = arith.constant 0 : i32
    %c0_i32_1 = arith.constant 0 : i32
    return %arg0, %c0_i32, %c0_i32_0 : i32, i32, i32
  }
}

</mosaic_0001>

<bundles_post_ra>
// kernel: tpu_custom_call.1
= control target key start
LH: loop header
LB: loop body
LE: loop exit
PB: predicated region body
PF: predicated region fallthrough
CT: control target
= control target key end

     0   :  { %s3418_s0 = inlined_call_operand.hbm [shape: f32[4,16,128], index: 0, kind: input, shape index: {}]   ;;  %s3419_s1 = inlined_call_operand.hbm [shape: f32[128,384], index: 1, kind: input, shape index: {}]   ;;  %s3420_s2 = inlined_call_operand.vmem [shape: f32[1,384], index: 2, kind: input, shape index: {}]   ;;  %s3421_s3 = inlined_call_operand.hbm [shape: f32[128,128], index: 3, kind: input, shape index: {}]   ;;  %s3422_s4 = inlined_call_operand.vmem [shape: f32[1,128], index: 4, kind: input, shape index: {}]   ;;  %s3423_s5 = inlined_call_operand.hbm [shape: f32[128,512], index: 5, kind: input, shape index: {}]   ;;  %s3424_s6 = inlined_call_operand.hbm [shape: f32[512,128], index: 6, kind: input, shape index: {}]   ;;  %s3425_s7 = inlined_call_operand.vmem [shape: f32[16,16], index: 7, kind: input, shape index: {}]   ;;  %s3426_s8 = inlined_call_operand.hbm [shape: f32[4,16,128], index: 8, kind: output, shape index: {0}]   ;;  %s3427_s9 = inlined_call_operand.hbm [shape: f32[4,1,16], index: 9, kind: output, shape index: {1}]  }
   0x1   :  { %3433 = sst [smem:[#allocation21_spill]] %s3419_s1 }
   0x2   :  { %15 = vsyncpa [#allocation3], 0 }
   0x3   :  { %17 = vsyncpa [#allocation3 + $0x1], 0 }
   0x4   :  { %18 = vsyncpa [#allocation6], 0 }
   0x5   :  { %19 = vsyncpa [#allocation9], 0 }
   0x6   :  { %20 = vsyncpa [#allocation4], 0 }
   0x7   :  { %22 = vsyncpa [#allocation4 + $0x1], 0 }
   0x8   :  { %23 = vsyncpa [#allocation13], 0 }
   0x9   :  { %25 = vsyncpa [#allocation13 + $0x1], 0  ;;  %s2610_s30 = smov 0   ;;  %s2612_s10 = smov 0  }
   0xa   :  { %s2614_s11 = smov 0   ;;  %s2616_s12 = smov 0  }
   0xb LB: > { %3434 = sst [smem:[#allocation19_spill]] %s2528_s30  ;;  %s2631_s13 = sadd.s32 4294967295, %s2540_s12   ;;  %s2540_s12 = sphi %s2616_s12, %s3581_s12   ;;  %s2536_s11 = sphi %s2614_s11, %s3580_s11   ;;  %s2532_s10 = sphi %s2612_s10, %s3579_s10   ;;  %s2528_s30 = sphi %s2610_s30, %s3578_s30  }
   0xc   : > { %s1956_s14 = sadd.s32 4294967294, %s2540_s12   ;;  %p51_p0 = scmp.ne.s32.totalorder %s2532_s10, %s2528_s30 }
   0xd   : > { %p3428_p1 = scmp.eq.s32.totalorder %s2631_s13, 0  ;;  %p228_p3 = scmp.eq.s32.totalorder %s1956_s14, 3 }
   0xe   : > { %p1957_p5 = scmp.ge.s32.totalorder %s2540_s12, 1  ;;  %p261_p7 = scmp.lt.s32.totalorder %s2540_s12, 5 }
   0xf   : > { %p2640_p4 = por %p3428_p1, %p51_p0  ;;  %p2645_p6 = por %p228_p3, %p51_p0 }
  0x10   : > { %p2650_p8 = pnand %p1957_p5, %p261_p7  ;;  %s2542_s18 = smov [#allocation5]  }
  0x11   : > { %s3435_s15 = scalar_select %p2640_p4, 1, 0 }
  0x12   : > { %s3436_s16 = scalar_select %p2645_p6, 1, 0 }
  0x13   : > { %s3438_s17 = scalar_select %p2650_p8, 1, 0 }
  0x14   : > { %3437 = sst [smem:[#allocation20_spill]] %s3436_s16  ;;  %s273_s19 = sshll.u32 %s2542_s18, 4  ;;  %s274_s19 = int_to_ptr.vmem [resolvable:$true] %s273_s19 }
  0x15   : > { %p2203_p9 = pneg %p2650_p8  ;;  %s2543_s21 = smov [#allocation8]  }
  0x16   : > { %s305_s22 = sshll.u32 %s2543_s21, 4  ;;  %s3440_s1 = sld [smem:[#allocation21_spill]]  ;;  %s2662_s22 = int_to_ptr.vmem [resolvable:$true] %s305_s22 }
  0x17   : > { %p2658_p10 = pnand %p2203_p9, %p3428_p1 }
  0x19   : > { %p2672_p12 = pneg %p2658_p10 }
  0x1c   : > { %s2292_s25 = scalar_lea.hbm %s3440_s1, 6144 }
  0x1d   : > { %p2293_p11 = scmp.ne.s32.totalorder %s3440_s1, %s2292_s25  ;;  %p2299_p3 = scmp.lt.u32.totalorder %s2292_s25, %s3440_s1 }
  0x1f   : > { %p2295_p13 = pnand %p2672_p12, %p2293_p11 }
  0x21   : > { %p2296_p0 = pneg %p2295_p13 }
  0x23   : > { %p2301_p5 = pnand %p2299_p3, %p2296_p0 }
  0x25   : > { %2304 = shalt.err (!%p2301_p5)
}
  0x26   : > { %s2305_s18 = scalar_lea.vmem %s274_s19, 6144  ;;  %p2313_p2 = scmp.lt.s32.totalorder %s274_s19, %s274_s19 }
  0x27   : > { %p2306_p7 = scmp.ne.s32.totalorder %s274_s19, %s2305_s18  ;;  %p2314_p6 = scmp.lt.s32.totalorder %s2305_s18, %s2305_s18 }
  0x29   : > { %p2308_p9 = pnand %p2306_p7, %p2672_p12  ;;  %p2315_p4 = por %p2314_p6, %p2313_p2 }
  0x2b   : > { %p2309_p1 = pneg %p2308_p9 }
  0x2d   : > { %p2316_p8 = pnand %p2315_p4, %p2309_p1 }
  0x2f   : > { %2319 = shalt.err (!%p2316_p8)
}
  0x30   : > { %s2544_s21 = smov 384   ;;  %s2545_s23 = smov 24  }
  0x31   : > { %2206 = dma.hbm_to_vmem [thread:$0]  (!%p2658_p10), %s3440_s1, 6144, %s274_s19, [#allocation6], %s2544_s21, %s2544_s21, %s2545_s23  }
  0x32   : > { %s2320_s29 = scalar_lea.hbm %s3423_s5, 8192 }
  0x33   : > { %p2321_p11 = scmp.ne.s32.totalorder %s3423_s5, %s2320_s29  ;;  %p2327_p4 = scmp.lt.u32.totalorder %s2320_s29, %s3423_s5 }
  0x35   : > { %p2323_p1 = pnand %p2321_p11, %p2672_p12 }
  0x37   : > { %p2324_p2 = pneg %p2323_p1 }
  0x39   : > { %p2329_p6 = pnand %p2327_p4, %p2324_p2 }
  0x3b   : > { %2332 = shalt.err (!%p2329_p6)
}
  0x3c   : > { %s2333_s19 = scalar_lea.vmem %s2662_s22, 8192  ;;  %p2341_p3 = scmp.lt.s32.totalorder %s2662_s22, %s2662_s22 }
  0x3d   : > { %p2334_p8 = scmp.ne.s32.totalorder %s2662_s22, %s2333_s19  ;;  %p2342_p5 = scmp.lt.s32.totalorder %s2333_s19, %s2333_s19 }
  0x3f   : > { %p2336_p13 = pnand %p2334_p8, %p2672_p12  ;;  %p2343_p7 = por %p2342_p5, %p2341_p3 }
  0x41   : > { %p2337_p0 = pneg %p2336_p13 }
  0x43   : > { %p2344_p9 = pnand %p2343_p7, %p2337_p0 }
  0x45   : > { %2347 = shalt.err (!%p2344_p9)
}
  0x46   : > { %s2546_s16 = smov 512   ;;  %s2547_s30 = smov 32  }
  0x47   : > { %2212 = dma.hbm_to_vmem [thread:$0]  (!%p2658_p10), %s3423_s5, 8192, %s2662_s22, [#allocation9], %s2546_s16, %s2546_s16, %s2547_s30  }
  0x48   : > { %s2548_s24 = smov [#allocation7]   ;;  %s2348_s29 = scalar_lea.hbm %s3421_s3, 2048 }
  0x49   : > { %s289_s25 = sshll.u32 %s2548_s24, 4  ;;  %p2349_p11 = scmp.ne.s32.totalorder %s3421_s3, %s2348_s29  ;;  %s290_s25 = int_to_ptr.vmem [resolvable:$true] %s289_s25 }
  0x4a   : > { %p2355_p4 = scmp.lt.u32.totalorder %s2348_s29, %s3421_s3 }
  0x4b   : > { %p2351_p1 = pnand %p2349_p11, %p2672_p12 }
  0x4d   : > { %p2352_p2 = pneg %p2351_p1 }
  0x4f   : > { %p2357_p6 = pnand %p2355_p4, %p2352_p2 }
  0x51   : > { %2360 = shalt.err (!%p2357_p6)
}
  0x52   : > { %s2361_s22 = scalar_lea.vmem %s290_s25, 2048  ;;  %p2369_p3 = scmp.lt.s32.totalorder %s290_s25, %s290_s25 }
  0x53   : > { %p2362_p8 = scmp.ne.s32.totalorder %s290_s25, %s2361_s22  ;;  %p2370_p5 = scmp.lt.s32.totalorder %s2361_s22, %s2361_s22 }
  0x55   : > { %p2364_p13 = pnand %p2362_p8, %p2672_p12  ;;  %p2371_p7 = por %p2370_p5, %p2369_p3 }
  0x57   : > { %p2365_p0 = pneg %p2364_p13 }
  0x59   : > { %p2372_p9 = pnand %p2371_p7, %p2365_p0 }
  0x5b   : > { %2375 = shalt.err (!%p2372_p9)
}
  0x5c   : > { %s2549_s16 = smov 128   ;;  %s2550_s30 = smov 8  }
  0x5d   : > { %2209 = dma.hbm_to_vmem [thread:$0]  (!%p2658_p10), %s3421_s3, 2048, %s290_s25, [#allocation6], %s2549_s16, %s2549_s16, %s2550_s30  }
  0x5e   : > { %s2551_s23 = smov [#allocation10]   ;;  %s2376_s29 = scalar_lea.hbm %s3424_s6, 8192 }
  0x5f   : > { %s318_s24 = sshll.u32 %s2551_s23, 4  ;;  %p2377_p11 = scmp.ne.s32.totalorder %s3424_s6, %s2376_s29  ;;  %s319_s24 = int_to_ptr.vmem [resolvable:$true] %s318_s24 }
  0x60   : > { %p2383_p4 = scmp.lt.u32.totalorder %s2376_s29, %s3424_s6 }
  0x61   : > { %p2379_p1 = pnand %p2377_p11, %p2672_p12 }
  0x63   : > { %p2380_p2 = pneg %p2379_p1 }
  0x65   : > { %p2385_p6 = pnand %p2383_p4, %p2380_p2 }
  0x67   : > { %2388 = shalt.err (!%p2385_p6)
}
  0x68   : > { %s2389_s25 = scalar_lea.vmem %s319_s24, 8192  ;;  %p2397_p3 = scmp.lt.s32.totalorder %s319_s24, %s319_s24 }
  0x69   : > { %p2390_p8 = scmp.ne.s32.totalorder %s319_s24, %s2389_s25  ;;  %p2398_p5 = scmp.lt.s32.totalorder %s2389_s25, %s2389_s25 }
  0x6b   : > { %p2392_p13 = pnand %p2390_p8, %p2672_p12  ;;  %p2399_p7 = por %p2398_p5, %p2397_p3 }
  0x6d   : > { %p2393_p0 = pneg %p2392_p13 }
  0x6f   : > { %p2400_p9 = pnand %p2399_p7, %p2393_p0 }
  0x71   : > { %2403 = shalt.err (!%p2400_p9)
}
  0x72   : > { %2215 = dma.hbm_to_vmem [thread:$0]  (!%p2658_p10), %s3424_s6, 8192, %s319_s24, [#allocation9], %s2549_s16, %s2549_s16, %s2550_s30  }
  0x73   : > { %s2754_s28 = sadd.s32 1, %s2540_s12   ;;  %s38_s20 = sadd.s32 1, %s2536_s11 }
  0x74   : > { %s35_s23 = ssub.s32 %s2540_s12, %s2754_s28  ;;  %p45_p12 = scmp.ne.s32.totalorder %s2536_s11, %s2532_s10 }
  0x75   : > { %p36_p11 = scmp.eq.s32.totalorder %s35_s23, 0  ;;  %p46_p1 = scmp.eq.s32.totalorder %s2540_s12, 0 }
  0x76   : > { %p3442_p2 = scmp.eq.s32.totalorder %s2631_s13, 3  ;;  %p2231_p6 = scmp.lt.s32.totalorder %s2540_s12, 4 }
  0x77   : > { %s2770_s27 = scalar_select %p36_p11, %s2536_s11, %s38_s20  }
  0x78   : > { %p2764_p4 = por %p3442_p2, %p45_p12  ;;  %p47_p8 = por %p46_p1, %p45_p12 }
  0x79   : > { %s335_s29 = sand.u32 1, %s2536_s11   ;;  %s1991_s24 = sshll.u32 %s2540_s12, 8 }
  0x7a   : > { %s1963_s14 = sshll.u32 %s335_s29, 4  ;;  %s2777_s22 = scalar_lea.hbm %s3418_s0, %s1991_s24 }
  0x7b   : > { %s339_s25 = scalar_lea.vmem [#allocation2], %s1963_s14  ;;  %p2781_p10 = pnand %p2231_p6, %p47_p8 }
  0x7c   : > { %s346_s1 = sshll.u32 %s339_s25, 4  ;;  %s2785_s20 = scalar_lea.sflag [#allocation3], %s335_s29  ;;  %s2779_s1 = int_to_ptr.vmem [resolvable:$true] %s346_s1 }
  0x7d   : > { %s2404_s23 = scalar_lea.hbm %s2777_s22, 256  ;;  %p2406_p0 = pneg %p2781_p10 }
  0x7e   : > { %p2405_p13 = scmp.ne.s32.totalorder %s2777_s22, %s2404_s23  ;;  %s2409_s18 = scalar_lea.hbm %s3418_s0, 1024 }
  0x7f   : > { %p2410_p7 = scmp.lt.u32.totalorder %s2777_s22, %s3418_s0  ;;  %p2411_p9 = scmp.lt.u32.totalorder %s2409_s18, %s2404_s23 }
  0x80   : > { %p2407_p3 = pnand %p2406_p0, %p2405_p13  ;;  %p2413_p11 = scmp.lt.u32.totalorder %s2404_s23, %s2777_s22 }
  0x81   : > { %p2412_p12 = por %p2411_p9, %p2410_p7 }
  0x82   : > { %p2408_p5 = pneg %p2407_p3 }
  0x83   : > { %p2414_p1 = por %p2413_p11, %p2412_p12 }
  0x85   : > { %p2415_p2 = pnand %p2414_p1, %p2408_p5 }
  0x87   : > { %2418 = shalt.err (!%p2415_p2)
}
  0x88   : > { %s2419_s29 = scalar_lea.vmem %s2779_s1, 256  ;;  %s2552_s14 = smov [#allocation2]  }
  0x89   : > { %p2420_p6 = scmp.ne.s32.totalorder %s2779_s1, %s2419_s29  ;;  %s2424_s24 = sshll.u32 %s2552_s14, 4  ;;  %s2425_s24 = int_to_ptr.vmem [resolvable:$false] %s2424_s24 }
  0x8a   : > { %s2426_s19 = scalar_lea.vmem %s2425_s24, 512  ;;  %p2427_p3 = scmp.lt.s32.totalorder %s2779_s1, %s2425_s24 }
  0x8b   : > { %p2422_p8 = pnand %p2420_p6, %p2406_p0  ;;  %p2428_p7 = scmp.lt.s32.totalorder %s2426_s19, %s2419_s29 }
  0x8d   : > { %p2423_p13 = pneg %p2422_p8  ;;  %p2429_p9 = por %p2428_p7, %p2427_p3 }
  0x8f   : > { %p2430_p12 = pnand %p2429_p9, %p2423_p13 }
  0x91   : > { %2433 = shalt.err (!%p2430_p12)
}
  0x92   : > { %2219 = dma.hbm_to_vmem [thread:$0]  (!%p2781_p10), %s2777_s22, 256, %s2779_s1, %s2785_s20, %s2549_s16, %s2549_s16, %s2550_s30  }
  0x93   : > { %p3445_p0 = scmp.ne.s32.totalorder %s3438_s17, 0 }
  0x94   : > { %s2819_s23 = sand.u32 (!%p3445_p0), 1, %s2532_s10   ;;  %p3446_p5 = scmp.ne.s32.totalorder (!%p3445_p0), %s3435_s15, 0 }
  0x95   : > { %358 = sbr.rel (%p3445_p0) target bundleno = 3326 (0xcfe), region = 52  ;;  %s1967_s18 = sshll.u32 (!%p3445_p0), %s2819_s23, 4 }
  0x96   : > { %s361_s25 = scalar_lea.sflag (!%p3445_p0), [#allocation3], %s2819_s23  ;;  %s2825_s21 = scalar_lea.vmem (!%p3445_p0), [#allocation2], %s1967_s18 }
  0x9c   : > { %2507 = dma.done.wait (%p3446_p5), %s361_s25, 256  }
  0x9d   : > { %2509 = vsyncadd (%p3446_p5), %s361_s25, 4294967040  ;;  %p3447_p10 = scmp.eq.s32.totalorder %s2631_s13, 0 }
  0x9f   : > { %2511 = dma.done.wait (%p3447_p10), [#allocation6], 8192   ;;  %p3448_p11 = pmov %p3447_p10 }
  0xa0   : > { %p3449_p1 = pmov %p3447_p10 }
  0xa1   : > { %2513 = vsyncadd (%p3448_p11), [#allocation6], 4294959104 }
  0xa2   : > { %2515 = dma.done.wait (%p3449_p1), [#allocation9], 16384   ;;  %p3450_p2 = pmov %p3449_p1 }
  0xa3   : > { %v2553_v0 = vmov 0   ;;  %v2554_v1 = vmov 0.0   ;;  %v424_v2 = vld [vmem:[#allocation5 + $0x8] sm:$0xff]  ;;  %v427_v3 = vld [vmem:[#allocation5 + $0x20] sm:$0xff]  ;;  %v426_v6 = vld [vmem:[#allocation5 + $0x18] sm:$0xff]  ;;  %vm2555_vm0 = vmmov 0  }
  0xa4   : > { %2517 = vsyncadd (%p3450_p2), [#allocation9], 4294950912  ;;  %544 = vmatprep.mubr.bf16.mxu0 %v2553_v0  ;;  %2067 = vmatprep.subr.bf16.mxu1 %v2554_v1  ;;  %v423_v4 = vld [vmem:[#allocation5] sm:$0xff]  ;;  %v472_v5 = vpack.c.bf16 %v427_v3, %v424_v2  ;;  %v430_v7 = vld [vmem:[#allocation5 + $0x38] sm:$0xff] }
  0xa5   : > { %v433_v8 = vld [vmem:[#allocation5 + $0x50] sm:$0xff]  ;;  %v471_v9 = vpack.c.bf16 %v426_v6, %v423_v4  ;;  %v432_v12 = vld [vmem:[#allocation5 + $0x48] sm:$0xff]  ;;  %v439_v14 = vld [vmem:[#allocation5 + $0x80] sm:$0xff]  ;;  %2083 = vmatprep.mubr.msk.bf16.mxu1 %vm2555_vm0, %v2554_v1 }
  0xa6   : > { %v475_v10 = vpack.c.bf16 %v433_v8, %v430_v7  ;;  %v429_v11 = vld [vmem:[#allocation5 + $0x30] sm:$0xff]  ;;  %v436_v13 = vld [vmem:[#allocation5 + $0x68] sm:$0xff]  ;;  %512 = vmatprep.subr.bf16.mxu0 %v472_v5  ;;  %v435_v17 = vld [vmem:[#allocation5 + $0x60] sm:$0xff] }
  0xa7   : > { %513 = vmatpush1.bf16.msra.mxu0 %v471_v9  ;;  %v474_v15 = vpack.c.bf16 %v432_v12, %v429_v11  ;;  %v478_v16 = vpack.c.bf16 %v439_v14, %v436_v13  ;;  %v438_v18 = vld [vmem:[#allocation5 + $0x78] sm:$0xff]  ;;  %v445_v20 = vld [vmem:[#allocation5 + $0xb0] sm:$0xff]  ;;  %v444_v24 = vld [vmem:[#allocation5 + $0xa8] sm:$0xff] }
  0xa8   : > { %514 = vmatprep.subr.bf16.mxu0 %v475_v10  ;;  %v442_v19 = vld [vmem:[#allocation5 + $0x98] sm:$0xff]  ;;  %v477_v21 = vpack.c.bf16 %v438_v18, %v435_v17  ;;  %v441_v23 = vld [vmem:[#allocation5 + $0x90] sm:$0xff]  ;;  %v448_v25 = vld [vmem:[#allocation5 + $0xc8] sm:$0xff] }
  0xa9   : > { %v481_v22 = vpack.c.bf16 %v445_v20, %v442_v19  ;;  %v451_v26 = vld [vmem:[#allocation5 + $0xe0] sm:$0xff]  ;;  %v425_v27 = vld [vmem:[#allocation5 + $0x10] sm:$0xff]  ;;  %v428_v28 = vld [vmem:[#allocation5 + $0x28] sm:$0xff]  ;;  %v480_v29 = vpack.c.bf16 %v444_v24, %v441_v23 }
  0xaa   : > { %v473_v30 = vpack.c.bf16 %v428_v28, %v425_v27  ;;  %v431_v31 = vld [vmem:[#allocation5 + $0x40] sm:$0xff]  ;;  %v434_v32 = vld [vmem:[#allocation5 + $0x58] sm:$0xff]  ;;  %v484_v33 = vpack.c.bf16 %v451_v26, %v448_v25  ;;  %v457_v37 = vld [vmem:[#allocation5 + $0x110] sm:$0xff] }
  0xab   : > { %515 = vmatpush1.bf16.msra.mxu0 %v474_v15  ;;  %v447_v34 = vld [vmem:[#allocation5 + $0xc0] sm:$0xff]  ;;  %v450_v35 = vld [vmem:[#allocation5 + $0xd8] sm:$0xff]  ;;  %v476_v38 = vpack.c.bf16 %v434_v32, %v431_v31  ;;  %v437_v39 = vld [vmem:[#allocation5 + $0x70] sm:$0xff]  ;;  %v497_v15 = vlaneseq }
  0xac   : > { %516 = vmatprep.subr.bf16.mxu0 %v478_v16  ;;  %v454_v36 = vld [vmem:[#allocation5 + $0xf8] sm:$0xff]  ;;  %2068 = vmatpush3.bf16.msra.mxu1 %v473_v30  ;;  %v440_v40 = vld [vmem:[#allocation5 + $0x88] sm:$0xff]  ;;  %v483_v41 = vpack.c.bf16 %v450_v35, %v447_v34  ;;  %v453_v43 = vld [vmem:[#allocation5 + $0xf0] sm:$0xff] }
  0xad   : > { %2069 = vmatprep.subr.bf16.mxu1 %v2554_v1  ;;  %v487_v42 = vpack.c.bf16 %v457_v37, %v454_v36  ;;  %v456_v44 = vld [vmem:[#allocation5 + $0x108] sm:$0xff]  ;;  %v463_v46 = vld [vmem:[#allocation5 + $0x140] sm:$0xff]  ;;  %v479_v47 = vpack.c.bf16 %v440_v40, %v437_v39  ;;  %v446_v49 = vld [vmem:[#allocation5 + $0xb8] sm:$0xff]  ;;  %v2858_v16 = vshrl.u32 %v497_v15, 7 }
  0xae   : > { %v460_v45 = vld [vmem:[#allocation5 + $0x128] sm:$0xff]  ;;  %v443_v48 = vld [vmem:[#allocation5 + $0xa0] sm:$0xff]  ;;  %v486_v50 = vpack.c.bf16 %v456_v44, %v453_v43  ;;  %v462_v53 = vld [vmem:[#allocation5 + $0x138] sm:$0xff] }
  0xaf   : > { %517 = vmatpush1.bf16.msra.mxu0 %v477_v21  ;;  %v490_v51 = vpack.c.bf16 %v463_v46, %v460_v45  ;;  %v459_v52 = vld [vmem:[#allocation5 + $0x120] sm:$0xff]  ;;  %v466_v54 = vld [vmem:[#allocation5 + $0x158] sm:$0xff]  ;;  %v469_v55 = vld [vmem:[#allocation5 + $0x170] sm:$0xff]  ;;  %v482_v56 = vpack.c.bf16 %v446_v49, %v443_v48  ;;  %v499_v17 = vsub.s32 0, %v2858_v16  ;;  %v503_v19 = vsub.s32 1, %v2858_v16 }
  0xb0   : > { %518 = vmatprep.subr.bf16.mxu0 %v481_v22  ;;  %2070 = vmatpush3.bf16.msra.mxu1 %v476_v38  ;;  %v449_v57 = vld [vmem:[#allocation5 + $0xd0] sm:$0xff]  ;;  %v452_v58 = vld [vmem:[#allocation5 + $0xe8] sm:$0xff]  ;;  %v489_v59 = vpack.c.bf16 %v462_v53, %v459_v52  ;;  %v493_v60 = vpack.c.bf16 %v469_v55, %v466_v54  ;;  %v455_v2 = vld [vmem:[#allocation5 + $0x100] sm:$0xff]  ;;  %v507_v32 = vsub.s32 2, %v2858_v16  ;;  %v3453_v46 = vmov 0 }
  0xb1   : > { %2071 = vmatprep.subr.bf16.mxu1 %v2554_v1  ;;  %v465_v61 = vld [vmem:[#allocation5 + $0x150] sm:$0xff]  ;;  %v468_v62 = vld [vmem:[#allocation5 + $0x168] sm:$0xff]  ;;  %v485_v63 = vpack.c.bf16 %v452_v58, %v449_v57  ;;  %v458_v3 = vld [vmem:[#allocation5 + $0x118] sm:$0xff] }
  0xb2   : > { %v492_v4 = vpack.c.bf16 %v468_v62, %v465_v61  ;;  %v420_v5 = vld [vmem:[%s2825_s21] sm:$0xff]  ;;  %v421_v6 = vld [vmem:[%s2825_s21 + $0x8] sm:$0xff]  ;;  %v488_v7 = vpack.c.bf16 %v458_v3, %v455_v2 }
  0xb3   : > { %519 = vmatpush1.bf16.msra.mxu0 %v480_v29  ;;  %v422_v8 = vpack.c.bf16 %v421_v6, %v420_v5  ;;  %v461_v9 = vld [vmem:[#allocation5 + $0x130] sm:$0xff]  ;;  %v464_v10 = vld [vmem:[#allocation5 + $0x148] sm:$0xff]  ;;  %v467_v12 = vld [vmem:[#allocation5 + $0x160] sm:$0xff] }
  0xb4   : > { %520 = vmatprep.subr.bf16.mxu0 %v484_v33  ;;  %2072 = vmatpush3.bf16.msra.mxu1 %v479_v47  ;;  %v491_v11 = vpack.c.bf16 %v464_v10, %v461_v9  ;;  %v470_v13 = vld [vmem:[#allocation5 + $0x178] sm:$0xff]  ;;  %v495_v18 = vld [vmem:[%s3420_s2] sm:$0x7]  ;;  %v3455_v47 = vmov 0 }
  0xb5   : > { %2073 = vmatprep.subr.bf16.mxu1 %v2554_v1  ;;  %v494_v14 = vpack.c.bf16 %v470_v13, %v467_v12  ;;  %v500_v20 = vrot.slane %v495_v18, %v499_v17  ;;  %v504_v22 = vrot.slane %v495_v18, %v503_v19  ;;  %v508_v33 = vrot.slane %v495_v18, %v507_v32 }
  0xb7   : > { %521 = vmatpush1.bf16.msra.mxu0 %v483_v41  ;;  %v2869_v41 = vand.u32 127, %v497_v15 }
  0xb8   : > { %522 = vmatprep.subr.bf16.mxu0 %v487_v42  ;;  %2074 = vmatpush3.bf16.msra.mxu1 %v482_v56  ;;  %v2872_v42 = vadd.s32 8, %v2858_v16 }
  0xb9   : > { %2075 = vmatprep.subr.bf16.mxu1 %v2554_v1  ;;  %v2876_v43 = vsub.s32 %v2858_v16, %v2869_v41 }
  0xba   : > { %v2880_v44 = vsub.s32 %v2872_v42, %v2869_v41 }
  0xbb   : > { %523 = vmatpush1.bf16.msra.mxu0 %v486_v50  ;;  %vm695_vm1 = vcmp.eq.s32.totalorder %v2876_v43, 2  ;;  %vm697_vm2 = vcmp.eq.s32.totalorder %v2876_v43, 4294967282  ;;  %vm646_vm3 = vcmp.eq.s32.totalorder %v2876_v43, 0  ;;  %vm648_vm4 = vcmp.eq.s32.totalorder %v2876_v43, 4294967280 }
  0xbc   : > { %524 = vmatprep.subr.bf16.mxu0 %v490_v51  ;;  %2076 = vmatpush3.bf16.msra.mxu1 %v485_v63  ;;  %vm696_vm5 = vcmp.eq.s32.totalorder %v2880_v44, 2  ;;  %vm698_vm6 = vcmp.eq.s32.totalorder %v2880_v44, 4294967282  ;;  %vm2888_vm7 = vmor %vm695_vm1, %vm697_vm2  ;;  %vm647_vm8 = vcmp.eq.s32.totalorder %v2880_v44, 0  ;;  %vm649_vm9 = vcmp.eq.s32.totalorder %v2880_v44, 4294967280 }
  0xbd   : > { %2077 = vmatprep.subr.bf16.mxu1 %v2554_v1  ;;  %vm2894_vm10 = vmor %vm646_vm3, %vm648_vm4  ;;  %vm719_vm11 = vcmp.eq.s32.totalorder %v2876_v43, 3  ;;  %vm721_vm12 = vcmp.eq.s32.totalorder %v2876_v43, 4294967283  ;;  %vm720_vm14 = vcmp.eq.s32.totalorder %v2880_v44, 3  ;;  %vm722_vm15 = vcmp.eq.s32.totalorder %v2880_v44, 4294967283 }
  0xbe   : > { %v3454_v46 = vsel %vm2894_vm10, 4294967295, %v3453_v46  ;;  %vm2900_vm13 = vmor %vm696_vm5, %vm698_vm6  ;;  %vm673_vm4 = vcmp.eq.s32.totalorder %v2876_v43, 4294967281  ;;  %vm769_vm1 = vcmp.eq.s32.totalorder %v2876_v43, 4294967285  ;;  %vm3465_vm5 = vcmp.eq.s32.totalorder %v2880_v44, 4294967281 }
  0xbf   : > { %525 = vmatpush1.bf16.msra.mxu0 %v489_v59  ;;  %v3456_v47 = vsel %vm2900_vm13, 4294967295, %v3455_v47  ;;  %vm2907_vm2 = vmor %vm647_vm8, %vm649_vm9  ;;  %vm3472_vm10 = vcmp.eq.s32.totalorder %v2880_v44, 4294967285 }
  0xc0   : > { %526 = vmatprep.subr.bf16.mxu0 %v493_v60  ;;  %2078 = vmatpush3.bf16.msra.mxu1 %v488_v7  ;;  %vm2914_vm6 = vmor %vm719_vm11, %vm721_vm12  ;;  %vm3466_vm11 = vcmp.eq.s32.totalorder %v2880_v44, 1 }
  0xc1   : > { %2079 = vmatprep.subr.bf16.mxu1 %v2554_v1  ;;  %vm2922_vm9 = vmor %vm720_vm14, %vm722_vm15  ;;  %vm3469_vm15 = vcmp.eq.s32.totalorder %v2876_v43, 5  ;;  %vm3473_vm14 = vcmp.eq.s32.totalorder %v2880_v44, 5 }
  0xc2   : > { %vm2944_vm8 = vmor %vm3466_vm11, %vm3465_vm5  ;;  %vm3486_vm5 = vcmp.eq.s32.totalorder %v2880_v44, 4 }
  0xc3   : > { %527 = vmatpush1.bf16.msra.mxu0 %v492_v4  ;;  %vm2956_vm3 = vmor %vm3469_vm15, %vm769_vm1 }
  0xc4   : > { %2099 = vmatprep.subr.bf16.mxu0 %v2554_v1  ;;  %2080 = vmatpush3.bf16.msra.mxu1 %v491_v11  ;;  %vm2971_vm1 = vmor %vm3473_vm14, %vm3472_vm10  ;;  %vm3476_vm10 = vnez %v3454_v46  ;;  %vm3477_vm14 = vcmp.eq.s32.totalorder %v2876_v43, 4294967284 }
  0xc5   : > { %2081 = vmatprep.subr.bf16.mxu1 %v2554_v1 }
  0xc6   : > { %545 = vmatmul.mubr.bf16.vlgmr.msra.gmra.mrb[0].mxu0 %v422_v8 }
  0xc7   : > { %2115 = vmatprep.mubr.msk.bf16.mxu0 %vm2555_vm0, %v2554_v1 }
  0xc8   : > { %2082 = vmatpush3.bf16.msra.mxu1 %v494_v14 }
  0xc9   : > { %2087 = vmatprep.subr.bf16.mxu1 %v2554_v1 }
  0xcb   : > { %2084 = vmatmul.mubr.bf16.vlgmr.msra.gmra.mrb[0].mxu1 %v422_v8 }
  0xcc   : > { %2089 = vmatprep.mubr.msk.bf16.mxu1 %vm2555_vm0, %v2554_v1 }
 0x199   : > { %v546_v21 = vpop.f32.mrb[0].mxu0 }
 0x19a   : > { %v548_v23 = vpop.f32.mrb[1].mxu0  ;;  %v547_v25 = vadd.f32 %v546_v21, %v500_v20 }
 0x19b   : > { %v550_v24 = vpop.f32.mrb[2].mxu0  ;;  %v549_v28 = vadd.f32 %v548_v23, %v504_v22 }
 0x19c   : > { %v551_v26 = vadd.f32 %v550_v24, %v500_v20  ;;  %v552_v27 = vpop.f32.mrb[3].mxu0 }
 0x19d   : > { %v553_v29 = vadd.f32 %v552_v27, %v504_v22 }
 0x19e   : > { %v596_v30 = vpack.c.bf16 %v551_v26, %v547_v25  ;;  %v589_v34 = vpop.f32.mrb[0].mxu1 }
 0x19f   : > { %v597_v31 = vpack.c.bf16 %v553_v29, %v549_v28  ;;  %v590_v35 = vadd.f32 %v589_v34, %v508_v33  ;;  %v2085_v36 = vpop.f32.mrb[1].mxu1 }
 0x1a0   : > { %v592_v37 = vpop.f32.mrb[2].mxu1 }
 0x1a1   : > { %2088 = vmatpush3.bf16.xpose.msra.mxu1 %v597_v31  ;;  %v593_v38 = vadd.f32 %v592_v37, %v508_v33  ;;  %v2086_v39 = vpop.f32.mrb[3].mxu1 }
 0x1a2   : > { %2093 = vmatprep.subr.bf16.mxu1 %v2554_v1 }
 0x1a3   : > { %v1125_v40 = vpack.c.bf16 %v593_v38, %v590_v35 }
 0x1a8   : > { %2090 = vmatmul.mubr.bf16.vlgmr.msra.gmra.mrb[4].mxu1 %v596_v30 }
 0x1a9   : > { %2095 = vmatprep.mubr.msk.bf16.mxu1 %vm2555_vm0, %v2554_v1  ;;  %2094 = vmatpush3.bf16.msra.mxu1 %v1125_v40  ;;  %vm671_vm0 = vcmp.eq.s32.totalorder %v2876_v43, 1 }
 0x1aa   : > { %vm2932_vm13 = vmor %vm671_vm0, %vm673_vm4  ;;  %vm866_vm0 = vcmp.eq.s32.totalorder %v2880_v44, 4294967289  ;;  %vm3478_vm4 = vcmp.eq.s32.totalorder %v2876_v43, 4 }
 0x1ab   : > { %vm2996_vm12 = vmor %vm3478_vm4, %vm3477_vm14 }
 0x27b   : > { %v2965_v54 = vpop.f32.mrb[4].mxu1 }
 0x27c   : > { %v2091_v56 = vpop.f32.mrb[5].mxu1  ;;  %v701_v57 = vsel %vm2888_vm7, %v2965_v54, 0.0  ;;  %v652_v58 = vsel %vm3476_vm10, %v2965_v54, 0.0  ;;  %v725_v59 = vsel %vm2914_vm6, %v2965_v54, 0.0  ;;  %v677_v60 = vsel %vm2932_vm13, %v2965_v54, 0.0 }
 0x27d   : > { %v3001_v62 = vpop.f32.mrb[6].mxu1  ;;  %vm3481_vm10 = vcmask 130048   ;;  %vm3485_vm13 = vcmp.eq.s32.totalorder %v2880_v44, 4294967284  ;;  %vm3498_vm7 = vcmp.eq.s32.totalorder %v2880_v44, 4294967287  ;;  %v773_v23 = vsel %vm2956_vm3, %v2965_v54, 0.0 }
 0x27e   : > { %v703_v63 = vsel %vm3481_vm10, %v701_v57, 0.0  ;;  %vm3482_vm15 = vmmov %vm3481_vm10  ;;  %v2092_v6 = vpop.f32.mrb[7].mxu1  ;;  %v653_v8 = vsel %vm2907_vm2, %v3001_v62, 0.0  ;;  %v726_v9 = vsel %vm2922_vm9, %v3001_v62, 0.0  ;;  %v678_v10 = vsel %vm2944_vm8, %v3001_v62, 0.0 }
 0x27f   : > { %v655_v2 = vsel %vm3482_vm15, %v652_v58, 0.0  ;;  %vm3483_vm6 = vmmov %vm3481_vm10  ;;  %vm3489_vm15 = vnez %v3456_v47  ;;  %vm961_vm2 = vcmp.eq.s32.totalorder %v2876_v43, 4294967293  ;;  %v774_v24 = vsel %vm2971_vm1, %v3001_v62, 0.0 }
 0x280   : > { %v727_v3 = vsel %vm3483_vm6, %v725_v59, 0.0  ;;  %vm3484_vm11 = vmmov %vm3483_vm6  ;;  %v702_v7 = vsel %vm3489_vm15, %v3001_v62, 0.0  ;;  %vm889_vm6 = vcmp.eq.s32.totalorder %v2876_v43, 4294967290  ;;  %vm3494_vm15 = vcmask 130048  }
 0x281   : > { %v679_v4 = vsel %vm3484_vm11, %v677_v60, 0.0  ;;  %vm3011_vm4 = vmor %vm3486_vm5, %vm3485_vm13  ;;  %vm3490_vm5 = vcmp.eq.s32.totalorder %v2876_v43, 4294967287  ;;  %vm3491_vm11 = vcmp.eq.s32.totalorder %v2876_v43, 7  ;;  %v704_v12 = vsel %vm3494_vm15, %v702_v7, 0.0 }
 0x282   : > { %vm3033_vm10 = vmor %vm3491_vm11, %vm3490_vm5  ;;  %vm3499_vm5 = vcmp.eq.s32.totalorder %v2880_v44, 7  ;;  %v705_v18 = vadd.f32 %v704_v12, %v703_v63  ;;  %v749_v25 = vsel %vm2996_vm12, %v2965_v54, 0.0  ;;  %v750_v26 = vsel %vm3011_vm4, %v3001_v62, 0.0 }
 0x283   : > { %vm3495_vm9 = vmmov %vm3494_vm15  ;;  %vm1010_vm15 = vcmp.eq.s32.totalorder %v2880_v44, 4294967295  ;;  %vm1009_vm3 = vcmp.eq.s32.totalorder %v2876_v43, 4294967295  ;;  %vm3510_vm1 = vcmask 130048   ;;  %v821_v34 = vsel %vm3033_vm10, %v2965_v54, 0.0 }
 0x284   : > { %v656_v13 = vsel %vm3495_vm9, %v653_v8, 0.0  ;;  %vm3496_vm14 = vmmov %vm3495_vm9  ;;  %706 = vadd.xlane.f32.xlu1 %v705_v18  ;;  %v775_v28 = vsel %vm3510_vm1, %v773_v23, 0.0  ;;  %vm3514_vm4 = vcmp.eq.s32.totalorder %v2880_v44, 9  ;;  %vm3519_vm10 = vcmp.eq.s32.totalorder %v2880_v44, 4294967288 }
 0x285   : > { %v728_v14 = vsel %vm3496_vm14, %v726_v9, 0.0  ;;  %vm3497_vm8 = vmmov %vm3495_vm9  ;;  %v657_v19 = vadd.f32 %v656_v13, %v655_v2  ;;  %vm3502_vm14 = vcmp.eq.s32.totalorder %v2876_v43, 4294967286  ;;  %vm3503_vm9 = vcmp.eq.s32.totalorder %v2876_v43, 6 }
 0x286   : > { %v680_v15 = vsel %vm3497_vm8, %v678_v10, 0.0  ;;  %vm3048_vm11 = vmor %vm3499_vm5, %vm3498_vm7  ;;  %v729_v20 = vadd.f32 %v728_v14, %v727_v3  ;;  %v893_v7 = vsel %vm889_vm6, %v2965_v54, 0.0  ;;  %v965_v13 = vsel %vm961_vm2, %v2965_v54, 0.0 }
 0x287   : > { %v681_v21 = vadd.f32 %v680_v15, %v679_v4  ;;  %vm3059_vm8 = vmor %vm3503_vm9, %vm3502_vm14  ;;  %vm3506_vm14 = vcmp.eq.s32.totalorder %v2880_v44, 4294967286  ;;  %vm3507_vm9 = vcmp.eq.s32.totalorder %v2880_v44, 6  ;;  %658 = vadd.xlane.f32.xlu0 %v657_v19  ;;  %v822_v35 = vsel %vm3048_vm11, %v3001_v62, 0.0 }
 0x288   : > { %vm3082_vm5 = vmor %vm3507_vm9, %vm3506_vm14  ;;  %v797_v39 = vsel %vm3059_vm8, %v2965_v54, 0.0  ;;  %vm3524_vm8 = vcmp.eq.s32.totalorder %v2876_v43, 4294967289  ;;  %730 = vadd.xlane.f32.xlu1 %v729_v20  ;;  %vm3551_vm6 = vcmp.eq.s32.totalorder %v2880_v44, 15  ;;  %vm3556_vm2 = vcmp.eq.s32.totalorder %v2880_v44, 4294967294 }
 0x289   : > { %vm3511_vm13 = vmmov %vm3510_vm1  ;;  %v798_v40 = vsel %vm3082_vm5, %v3001_v62, 0.0  ;;  %v799_v47 = vsel %vm3510_vm1, %v797_v39, 0.0  ;;  %v869_v49 = vsel %vm3524_vm8, %v2965_v54, 0.0  ;;  %vm3526_vm5 = vcmp.eq.s32.totalorder %v2880_v44, 11 }
 0x28a   : > { %v776_v29 = vsel %vm3511_vm13, %v774_v24, 0.0  ;;  %vm3512_vm12 = vmmov %vm3510_vm1  ;;  %vm985_vm13 = vcmp.eq.s32.totalorder %v2876_v43, 4294967294  ;;  %v1013_v24 = vsel %vm1009_vm3, %v2965_v54, 0.0 }
 0x28b   : > { %v751_v30 = vsel %vm3512_vm12, %v749_v25, 0.0  ;;  %vm3513_vm7 = vmmov %vm3510_vm1  ;;  %v777_v32 = vadd.f32 %v776_v29, %v775_v28  ;;  %682 = vadd.xlane.f32.xlu0 %v681_v21 }
 0x28c   : > { %v752_v31 = vsel %vm3513_vm7, %v750_v26, 0.0  ;;  %vm3101_vm14 = vmor %vm3514_vm4, %vm866_vm0  ;;  %vm3520_vm0 = vcmp.eq.s32.totalorder %v2880_v44, 8  ;;  %vm3525_vm4 = vcmp.eq.s32.totalorder %v2880_v44, 4294967291 }
 0x28d   : > { %v753_v33 = vadd.f32 %v752_v31, %v751_v30  ;;  %vm3517_vm7 = vmmov %vm3510_vm1  ;;  %v870_v52 = vsel %vm3101_vm14, %v3001_v62, 0.0  ;;  %778 = vadd.xlane.f32.xlu1 %v777_v32  ;;  %v989_v30 = vsel %vm985_vm13, %v2965_v54, 0.0  ;;  %vm667_vm13 = vcmp.eq.s32.totalorder %v2869_v41, 0 }
 0x28e   : > { %v823_v37 = vsel %vm3517_vm7, %v821_v34, 0.0  ;;  %vm3518_vm9 = vmmov %vm3510_vm1 }
 0x28f   : > { %v824_v38 = vsel %vm3518_vm9, %v822_v35, 0.0  ;;  %vm3118_vm11 = vmor %vm3520_vm0, %vm3519_vm10  ;;  %vm3530_vm10 = vcmp.eq.s32.totalorder %v2876_v43, 4294967288  ;;  %vm3531_vm0 = vcmp.eq.s32.totalorder %v2880_v44, 4294967290  ;;  %754 = vadd.xlane.f32.xlu0 %v753_v33 }
 0x290   : > { %v825_v46 = vadd.f32 %v824_v38, %v823_v37  ;;  %vm3523_vm12 = vmmov %vm3510_vm1  ;;  %v845_v55 = vsel %vm3530_vm10, %v2965_v54, 0.0  ;;  %v846_v58 = vsel %vm3118_vm11, %v3001_v62, 0.0  ;;  %vm3540_vm10 = vcmp.eq.s32.totalorder %v2880_v44, 4294967293 }
 0x291   : > { %v800_v48 = vsel %vm3523_vm12, %v798_v40, 0.0  ;;  %vm3131_vm7 = vmor %vm3526_vm5, %vm3525_vm4  ;;  %vm3537_vm4 = vcmp.eq.s32.totalorder %v2876_v43, 4294967291 }
 0x292   : > { %v801_v51 = vadd.f32 %v800_v48, %v799_v47  ;;  %vm3529_vm9 = vmmov %vm3510_vm1  ;;  %vm3532_vm1 = vcmp.eq.s32.totalorder %v2880_v44, 10  ;;  %v917_v60 = vsel %vm3537_vm4, %v2965_v54, 0.0  ;;  %v918_v2 = vsel %vm3131_vm7, %v3001_v62, 0.0  ;;  %826 = vadd.xlane.f32.xlu1 %v825_v46 }
 0x293   : > { %v871_v53 = vsel %vm3529_vm9, %v869_v49, 0.0  ;;  %vm3146_vm12 = vmor %vm3532_vm1, %vm3531_vm0  ;;  %vm3541_vm0 = vcmp.eq.s32.totalorder %v2880_v44, 13  ;;  %vm3545_vm7 = vcmp.eq.s32.totalorder %v2880_v44, 4294967292 }
 0x294   : > { %vm3535_vm8 = vmmov %vm3529_vm9  ;;  %v894_v8 = vsel %vm3146_vm12, %v3001_v62, 0.0  ;;  %802 = vadd.xlane.f32.xlu0 %v801_v51 }
 0x295   : > { %v872_v57 = vsel %vm3535_vm8, %v870_v52, 0.0  ;;  %vm3536_vm14 = vmmov %vm3535_vm8 }
 0x296   : > { %v847_v59 = vsel %vm3536_vm14, %v845_v55, 0.0  ;;  %v873_v61 = vadd.f32 %v872_v57, %v871_v53  ;;  %vm3538_vm5 = vmmov %vm3535_vm8  ;;  %vm3546_vm8 = vcmp.eq.s32.totalorder %v2880_v44, 12 }
 0x297   : > { %v848_v63 = vsel %vm3538_vm5, %v846_v58, 0.0  ;;  %vm3539_vm9 = vmmov %vm3538_vm5 }
 0x298   : > { %v919_v3 = vsel %vm3539_vm9, %v917_v60, 0.0  ;;  %vm3167_vm11 = vmor %vm3541_vm0, %vm3540_vm10  ;;  %v849_v5 = vadd.f32 %v848_v63, %v847_v59  ;;  %vm3555_vm10 = vcmp.eq.s32.totalorder %v2876_v43, 4294967292  ;;  %vm3557_vm0 = vcmp.eq.s32.totalorder %v2880_v44, 14  ;;  %874 = vadd.xlane.f32.xlu1 %v873_v61 }
 0x299   : > { %vm3544_vm1 = vmmov %vm3538_vm5  ;;  %v966_v17 = vsel %vm3167_vm11, %v3001_v62, 0.0  ;;  %v941_v19 = vsel %vm3555_vm10, %v2965_v54, 0.0  ;;  %vm787_vm10 = vcmp.eq.s32.totalorder %v2869_v41, 5 }
 0x29a   : > { %v920_v6 = vsel %vm3544_vm1, %v918_v2, 0.0  ;;  %vm3182_vm14 = vmor %vm3546_vm8, %vm3545_vm7  ;;  %850 = vadd.xlane.f32.xlu0 %v849_v5 }
 0x29b   : > { %v921_v10 = vadd.f32 %v920_v6, %v919_v3  ;;  %vm3549_vm4 = vmmov %vm3544_vm1  ;;  %v942_v22 = vsel %vm3182_vm14, %v3001_v62, 0.0 }
 0x29c   : > { %v895_v11 = vsel %vm3549_vm4, %v893_v7, 0.0  ;;  %vm3550_vm5 = vmmov %vm3544_vm1 }
 0x29d   : > { %v896_v12 = vsel %vm3550_vm5, %v894_v8, 0.0  ;;  %vm3195_vm12 = vmor %vm3551_vm6, %vm1010_vm15  ;;  %922 = vadd.xlane.f32.xlu1 %v921_v10  ;;  %vm691_vm5 = vcmp.eq.s32.totalorder %v2869_v41, 1  ;;  %vm715_vm6 = vcmp.eq.s32.totalorder %v2869_v41, 2 }
 0x29e   : > { %v897_v15 = vadd.f32 %v896_v12, %v895_v11  ;;  %vm3554_vm9 = vmmov %vm3544_vm1  ;;  %v1014_v44 = vsel %vm3195_vm12, %v3001_v62, 0.0  ;;  %vm739_vm12 = vcmp.eq.s32.totalorder %v2869_v41, 3 }
 0x29f   : > { %v967_v18 = vsel %vm3554_vm9, %v965_v13, 0.0  ;;  %vm3210_vm1 = vmor %vm3557_vm0, %vm3556_vm2  ;;  %v1016_v29 = vsel %vm3549_vm4, %v1014_v44, 0.0  ;;  %vm763_vm9 = vcmp.eq.s32.totalorder %v2869_v41, 4  ;;  %vm811_vm2 = vcmp.eq.s32.totalorder %v2869_v41, 6 }
 0x2a0   : > { %vm3560_vm15 = vmmov %vm3549_vm4  ;;  %v990_v31 = vsel %vm3210_vm1, %v3001_v62, 0.0  ;;  %898 = vadd.xlane.f32.xlu0 %v897_v15  ;;  %vm835_vm0 = vcmp.eq.s32.totalorder %v2869_v41, 7  ;;  %vm859_vm1 = vcmp.eq.s32.totalorder %v2869_v41, 8 }
 0x2a1   : > { %v968_v21 = vsel %vm3560_vm15, %v966_v17, 0.0  ;;  %vm3561_vm11 = vmmov %vm3549_vm4  ;;  %vm883_vm15 = vcmp.eq.s32.totalorder %v2869_v41, 9 }
 0x2a2   : > { %v943_v23 = vsel %vm3561_vm11, %v941_v19, 0.0  ;;  %v969_v25 = vadd.f32 %v968_v21, %v967_v18  ;;  %vm3562_vm7 = vmmov %vm3549_vm4  ;;  %vm907_vm11 = vcmp.eq.s32.totalorder %v2869_v41, 10 }
 0x2a3   : > { %v944_v26 = vsel %vm3562_vm7, %v942_v22, 0.0  ;;  %vm3563_vm8 = vmmov %vm3549_vm4  ;;  %vm931_vm7 = vcmp.eq.s32.totalorder %v2869_v41, 11 }
 0x2a4   : > { %v1015_v27 = vsel %vm3563_vm8, %v1013_v24, 0.0  ;;  %v945_v28 = vadd.f32 %v944_v26, %v943_v23  ;;  %vm3564_vm3 = vmmov %vm3549_vm4  ;;  %970 = vadd.xlane.f32.xlu1 %v969_v25  ;;  %vm955_vm8 = vcmp.eq.s32.totalorder %v2869_v41, 12  ;;  %vm979_vm4 = vcmp.eq.s32.totalorder %v2869_v41, 13 }
 0x2a5   : > { %v1017_v32 = vadd.f32 %v1016_v29, %v1015_v27  ;;  %v991_v33 = vsel %vm3564_vm3, %v989_v30, 0.0  ;;  %vm3565_vm14 = vmmov %vm3564_vm3  ;;  %vm1003_vm3 = vcmp.eq.s32.totalorder %v2869_v41, 14 }
 0x2a6   : > { %v992_v34 = vsel %vm3565_vm14, %v990_v31, 0.0  ;;  %946 = vadd.xlane.f32.xlu0 %v945_v28  ;;  %vm1027_vm14 = vcmp.eq.s32.totalorder %v2869_v41, 15 }
 0x2a7   : > { %v993_v35 = vadd.f32 %v992_v34, %v991_v33 }
 0x2a8   : > { %1018 = vadd.xlane.f32.xlu1 %v1017_v32 }
 0x2aa   : > { %994 = vadd.xlane.f32.xlu0 %v993_v35 }
 0x311   : > { %v707_v43 = vpop.xlane.xlu1 %706 }
 0x312   : > { %v708_v36 = vrot.slane %v707_v43, 4 }
 0x314   : > { %v659_v54 = vpop.xlane.xlu0 %658  ;;  %v709_v38 = vadd.f32 %v708_v36, %v707_v43 }
 0x315   : > { %v660_v37 = vrot.slane %v659_v54, 4  ;;  %v731_v39 = vpop.xlane.xlu1 %730 }
 0x316   : > { %v710_v45 = vrot.slane %v709_v38, 2  ;;  %v732_v47 = vrot.slane %v731_v39, 4 }
 0x317   : > { %v661_v62 = vadd.f32 %v660_v37, %v659_v54 }
 0x318   : > { %v683_v40 = vpop.xlane.xlu0 %682  ;;  %v733_v49 = vadd.f32 %v732_v47, %v731_v39  ;;  %v711_v55 = vadd.f32 %v710_v45, %v709_v38 }
 0x319   : > { %v662_v46 = vrot.slane %v661_v62, 2  ;;  %v684_v48 = vrot.slane %v683_v40, 4 }
 0x31a   : > { %v779_v52 = vpop.xlane.xlu1 %778  ;;  %v734_v56 = vrot.slane %v733_v49, 2  ;;  %v712_v7 = vrot.slane %v711_v55, 1 }
 0x31b   : > { %v685_v50 = vadd.f32 %v684_v48, %v683_v40  ;;  %v663_v51 = vadd.f32 %v662_v46, %v661_v62  ;;  %v780_v58 = vrot.slane %v779_v52, 4 }
 0x31c   : > { %v755_v53 = vpop.xlane.xlu0 %754  ;;  %v735_v3 = vadd.f32 %v734_v56, %v733_v49  ;;  %v713_v22 = vadd.f32 %v712_v7, %v711_v55 }
 0x31d   : > { %v686_v57 = vrot.slane %v685_v50, 2  ;;  %v756_v59 = vrot.slane %v755_v53, 4  ;;  %v664_v60 = vrot.slane %v663_v51, 1  ;;  %v781_v61 = vadd.f32 %v780_v58, %v779_v52 }
 0x31e   : > { %v736_v13 = vrot.slane %v735_v3, 1 }
 0x31f   : > { %v757_v63 = vadd.f32 %v756_v59, %v755_v53  ;;  %v687_v2 = vadd.f32 %v686_v57, %v685_v50  ;;  %v827_v4 = vpop.xlane.xlu1 %826  ;;  %v665_v6 = vadd.f32 %v664_v60, %v663_v51  ;;  %v782_v8 = vrot.slane %v781_v61, 2 }
 0x320   : > { %v828_v10 = vrot.slane %v827_v4, 4  ;;  %v737_v23 = vadd.f32 %v736_v13, %v735_v3 }
 0x321   : > { %v803_v5 = vpop.xlane.xlu0 %802  ;;  %v758_v9 = vrot.slane %v757_v63, 2  ;;  %2141 = vpush %v665_v6  ;;  %v688_v12 = vrot.slane %v687_v2, 1  ;;  %v783_v18 = vadd.f32 %v782_v8, %v781_v61 }
 0x322   : > { %v804_v11 = vrot.slane %v803_v5, 4  ;;  %v829_v14 = vadd.f32 %v828_v10, %v827_v4 }
 0x323   : > { %v759_v17 = vadd.f32 %v758_v9, %v757_v63  ;;  %v689_v21 = vadd.f32 %v688_v12, %v687_v2  ;;  %v784_v28 = vrot.slane %v783_v18, 1 }
 0x324   : > { %v805_v15 = vadd.f32 %v804_v11, %v803_v5  ;;  %v830_v24 = vrot.slane %v829_v14, 2 }
 0x325   : > { %v875_v19 = vpop.xlane.xlu1 %874  ;;  %2143 = vpush %v689_v21  ;;  %v760_v27 = vrot.slane %v759_v17, 1  ;;  %v785_v43 = vadd.f32 %v784_v28, %v783_v18 }
 0x326   : > { %v806_v25 = vrot.slane %v805_v15, 2  ;;  %v876_v26 = vrot.slane %v875_v19, 4  ;;  %2145 = vpush %v713_v22  ;;  %v831_v32 = vadd.f32 %v830_v24, %v829_v14 }
 0x327   : > { %v851_v20 = vpop.xlane.xlu0 %850  ;;  %2147 = vpush %v737_v23  ;;  %v761_v35 = vadd.f32 %v760_v27, %v759_v17 }
 0x328   : > { %v852_v44 = vrot.slane %v851_v20, 4  ;;  %v877_v29 = vadd.f32 %v876_v26, %v875_v19  ;;  %v807_v31 = vadd.f32 %v806_v25, %v805_v15  ;;  %v832_v39 = vrot.slane %v831_v32, 1 }
 0x329   : > { %2149 = vpush %v761_v35 }
 0x32a   : > { %v853_v30 = vadd.f32 %v852_v44, %v851_v20  ;;  %v923_v33 = vpop.xlane.xlu1 %922  ;;  %v878_v54 = vrot.slane %v877_v29, 2  ;;  %v808_v62 = vrot.slane %v807_v31, 1  ;;  %2151 = vpush %v785_v43  ;;  %v833_v51 = vadd.f32 %v832_v39, %v831_v32 }
 0x32b   : > { %v924_v37 = vrot.slane %v923_v33, 4 }
 0x32c   : > { %v854_v36 = vrot.slane %v853_v30, 2  ;;  %v879_v47 = vadd.f32 %v878_v54, %v877_v29  ;;  %v809_v50 = vadd.f32 %v808_v62, %v807_v31 }
 0x32d   : > { %v899_v34 = vpop.xlane.xlu0 %898  ;;  %v925_v40 = vadd.f32 %v924_v37, %v923_v33 }
 0x32e   : > { %v900_v38 = vrot.slane %v899_v34, 4  ;;  %v855_v46 = vadd.f32 %v854_v36, %v853_v30  ;;  %2153 = vpush %v809_v50  ;;  %v880_v58 = vrot.slane %v879_v47, 1 }
 0x32f   : > { %v926_v52 = vrot.slane %v925_v40, 2  ;;  %2155 = vpush %v833_v51 }
 0x330   : > { %v901_v45 = vadd.f32 %v900_v38, %v899_v34  ;;  %v856_v57 = vrot.slane %v855_v46, 1  ;;  %v881_v5 = vadd.f32 %v880_v58, %v879_v47 }
 0x331   : > { %v971_v48 = vpop.xlane.xlu1 %970  ;;  %v927_v63 = vadd.f32 %v926_v52, %v925_v40 }
 0x332   : > { %v902_v53 = vrot.slane %v901_v45, 2  ;;  %v972_v55 = vrot.slane %v971_v48, 4  ;;  %v857_v4 = vadd.f32 %v856_v57, %v855_v46 }
 0x333   : > { %v947_v49 = vpop.xlane.xlu0 %946  ;;  %v928_v11 = vrot.slane %v927_v63, 1 }
 0x334   : > { %v948_v56 = vrot.slane %v947_v49, 4  ;;  %v973_v59 = vadd.f32 %v972_v55, %v971_v48  ;;  %v903_v61 = vadd.f32 %v902_v53, %v901_v45  ;;  %2157 = vpush %v857_v4 }
 0x335   : > { %v1019_v2 = vpop.xlane.xlu1 %1018  ;;  %2159 = vpush %v881_v5  ;;  %v929_v18 = vadd.f32 %v928_v11, %v927_v63 }
 0x336   : > { %v949_v60 = vadd.f32 %v948_v56, %v947_v49  ;;  %v974_v6 = vrot.slane %v973_v59, 2  ;;  %v1020_v8 = vrot.slane %v1019_v2, 4  ;;  %v904_v10 = vrot.slane %v903_v61, 1 }
 0x337   : > { %v995_v3 = vpop.xlane.xlu0 %994 }
 0x338   : > { %v950_v7 = vrot.slane %v949_v60, 2  ;;  %v996_v9 = vrot.slane %v995_v3, 4  ;;  %v1021_v12 = vadd.f32 %v1020_v8, %v1019_v2  ;;  %v975_v15 = vadd.f32 %v974_v6, %v973_v59 }
 0x339   : > { %v905_v17 = vadd.f32 %v904_v10, %v903_v61 }
 0x33a   : > { %v997_v13 = vadd.f32 %v996_v9, %v995_v3  ;;  %v951_v14 = vadd.f32 %v950_v7, %v949_v60  ;;  %v1022_v19 = vrot.slane %v1021_v12, 2  ;;  %v976_v22 = vrot.slane %v975_v15, 1 }
 0x33b   : > { %2161 = vpush %v905_v17 }
 0x33c   : > { %v998_v20 = vrot.slane %v997_v13, 2  ;;  %v952_v21 = vrot.slane %v951_v14, 1  ;;  %2163 = vpush %v929_v18  ;;  %v977_v24 = vadd.f32 %v976_v22, %v975_v15  ;;  %v1023_v26 = vadd.f32 %v1022_v19, %v1021_v12 }
 0x33e   : > { %v953_v23 = vadd.f32 %v952_v21, %v951_v14  ;;  %v999_v25 = vadd.f32 %v998_v20, %v997_v13  ;;  %v1024_v27 = vrot.slane %v1023_v26, 1 }
 0x340   : > { %2165 = vpush %v953_v23  ;;  %v1000_v44 = vrot.slane %v999_v25, 1  ;;  %v1025_v29 = vadd.f32 %v1024_v27, %v1023_v26 }
 0x341   : > { %2167 = vpush %v977_v24 }
 0x342   : > { %v1001_v28 = vadd.f32 %v1000_v44, %v999_v25 }
 0x344   : > { %2169 = vpush %v1001_v28 }
 0x345   : > { %2171 = vpush %v1025_v29 }
 0x352   : > { %s2142_s16 = spop %2141 }
 0x353   : > { %v668_v30 = vstv %s2142_s16 }
 0x354   : > { %v669_v32 = vsel %vm667_vm13, %v668_v30, 0.0  ;;  %vm1784_vm13 = vcmask 122880  }
 0x356   : > { %s2144_s30 = spop %2143 }
 0x357   : > { %v692_v31 = vstv %s2144_s30  ;;  %s2146_s22 = spop %2145 }
 0x358   : > { %v693_v33 = vsel %vm691_vm5, %v692_v31, 0.0  ;;  %v716_v34 = vstv %s2146_s22  ;;  %s2148_s1 = spop %2147  ;;  %vm3566_vm5 = vcmask 130048  }
 0x359   : > { %v694_v35 = vadd.f32 %v693_v33, %v669_v32  ;;  %v740_v43 = vstv %s2148_s1  ;;  %v717_v54 = vsel %vm715_vm6, %v716_v34, 0.0 }
 0x35a   : > { %s2150_s20 = spop %2149  ;;  %v741_v38 = vsel %vm739_vm12, %v740_v43, 0.0  ;;  %vm3567_vm12 = vmmov %vm3566_vm5 }
 0x35b   : > { %v718_v36 = vadd.f32 %v717_v54, %v694_v35  ;;  %v764_v37 = vstv %s2150_s20  ;;  %s2152_s29 = spop %2151  ;;  %s418_s20 = scalar_lea.vmem [#allocation12], %s2819_s23 }
 0x35c   : > { %v788_v39 = vstv %s2152_s29  ;;  %v765_v40 = vsel %vm763_vm9, %v764_v37, 0.0 }
 0x35d   : > { %v742_v62 = vadd.f32 %v741_v38, %v718_v36  ;;  %v789_v47 = vsel %vm787_vm10, %v788_v39, 0.0 }
 0x35f   : > { %s2154_s14 = spop %2153  ;;  %v766_v45 = vadd.f32 %v765_v40, %v742_v62 }
 0x360   : > { %v812_v46 = vstv %s2154_s14  ;;  %s2156_s24 = spop %2155 }
 0x361   : > { %v790_v48 = vadd.f32 %v789_v47, %v766_v45  ;;  %v836_v49 = vstv %s2156_s24  ;;  %v813_v50 = vsel %vm811_vm2, %v812_v46, 0.0  ;;  %vm3568_vm2 = vmmov %vm3566_vm5 }
 0x362   : > { %v837_v53 = vsel %vm835_vm0, %v836_v49, 0.0 }
 0x363   : > { %v814_v51 = vadd.f32 %v813_v50, %v790_v48 }
 0x365   : > { %s2158_s19 = spop %2157  ;;  %v838_v55 = vadd.f32 %v837_v53, %v814_v51  ;;  %v3267_v53 = vsub.s32 %v2869_v41, %v2858_v16 }
 0x366   : > { %v860_v52 = vstv %s2158_s19  ;;  %s2160_s25 = spop %2159 }
 0x367   : > { %v884_v56 = vstv %s2160_s25  ;;  %v861_v57 = vsel %vm859_vm1, %v860_v52, 0.0  ;;  %vm3569_vm1 = vmmov %vm3568_vm2 }
 0x368   : > { %v862_v58 = vadd.f32 %v861_v57, %v838_v55  ;;  %v885_v60 = vsel %vm883_vm15, %v884_v56, 0.0  ;;  %v3271_v55 = vsub.s32 %v2869_v41, %v2872_v42 }
 0x36a   : > { %v886_v61 = vadd.f32 %v885_v60, %v862_v58 }
 0x36c   : > { %s2162_s15 = spop %2161 }
 0x36d   : > { %v908_v59 = vstv %s2162_s15  ;;  %s2164_s17 = spop %2163  ;;  %s2556_s15 = smov [#allocation12]  }
 0x36e   : > { %v932_v63 = vstv %s2164_s17  ;;  %v909_v2 = vsel %vm907_vm11, %v908_v59, 0.0  ;;  %s2438_s17 = sshll.u32 %s2556_s15, 4  ;;  %s2439_s17 = int_to_ptr.vmem [resolvable:$false] %s2438_s17 }
 0x36f   : > { %v910_v3 = vadd.f32 %v909_v2, %v886_v61  ;;  %v933_v5 = vsel %vm931_vm7, %v932_v63, 0.0  ;;  %v1171_v2 = vld [vmem:[#allocation7] sm:$0xff] }
 0x371   : > { %s2166_s16 = spop %2165  ;;  %v934_v6 = vadd.f32 %v933_v5, %v910_v3  ;;  %v1172_v3 = vld [vmem:[#allocation7 + $0x8] sm:$0xff] }
 0x372   : > { %s2168_s30 = spop %2167  ;;  %v956_v4 = vstv %s2166_s16  ;;  %v1187_v5 = vpack.c.bf16 %v1172_v3, %v1171_v2  ;;  %v1358_v2 = vld [vmem:[#allocation8 + $0xd8] sm:$0xff]  ;;  %s2440_s16 = scalar_lea.vmem %s2439_s17, 32 }
 0x373   : > { %v980_v7 = vstv %s2168_s30  ;;  %v957_v8 = vsel %vm955_vm8, %v956_v4, 0.0  ;;  %v1173_v4 = vld [vmem:[#allocation7 + $0x10] sm:$0xff]  ;;  %v1362_v3 = vld [vmem:[#allocation8 + $0xf8] sm:$0xff] }
 0x374   : > { %v958_v9 = vadd.f32 %v957_v8, %v934_v6  ;;  %v981_v11 = vsel %vm979_vm4, %v980_v7, 0.0  ;;  %v1174_v6 = vld [vmem:[#allocation7 + $0x18] sm:$0xff]  ;;  %2100 = vmatpush3.bf16.msra.mxu0 %v1187_v5  ;;  %v1175_v8 = vld [vmem:[#allocation7 + $0x20] sm:$0xff]  ;;  %v1357_v5 = vld [vmem:[#allocation8 + $0xd0] sm:$0xff] }
 0x375   : > { %s2170_s22 = spop %2169  ;;  %v1188_v7 = vpack.c.bf16 %v1174_v6, %v1173_v4  ;;  %2101 = vmatprep.subr.bf16.mxu0 %v2554_v1  ;;  %v1410_v4 = vpack.c.bf16 %v1362_v3, %v1358_v2  ;;  %v1361_v6 = vld [vmem:[#allocation8 + $0xf0] sm:$0xff] }
 0x376   : > { %s2172_s1 = spop %2171  ;;  %v1004_v10 = vstv %s2170_s22  ;;  %v982_v12 = vadd.f32 %v981_v11, %v958_v9  ;;  %v1176_v9 = vld [vmem:[#allocation7 + $0x28] sm:$0xff]  ;;  %v1177_v11 = vld [vmem:[#allocation7 + $0x30] sm:$0xff] }
 0x377   : > { %v1028_v13 = vstv %s2172_s1  ;;  %v1005_v14 = vsel %vm1003_vm3, %v1004_v10, 0.0  ;;  %v1189_v10 = vpack.c.bf16 %v1176_v9, %v1175_v8  ;;  %v1366_v8 = vld [vmem:[#allocation8 + $0x118] sm:$0xff] }
 0x378   : > { %v1006_v15 = vadd.f32 %v1005_v14, %v982_v12  ;;  %v1029_v17 = vsel %vm1027_vm14, %v1028_v13, 0.0  ;;  %2102 = vmatpush3.bf16.msra.mxu0 %v1188_v7  ;;  %v1178_v12 = vld [vmem:[#allocation7 + $0x38] sm:$0xff]  ;;  %v1179_v14 = vld [vmem:[#allocation7 + $0x40] sm:$0xff]  ;;  %v1409_v7 = vpack.c.bf16 %v1361_v6, %v1357_v5  ;;  %v1372_v5 = vld [vmem:[#allocation8 + $0x148] sm:$0xff] }
 0x379   : > { %2103 = vmatprep.subr.bf16.mxu0 %v2554_v1  ;;  %v1190_v13 = vpack.c.bf16 %v1178_v12, %v1177_v11  ;;  %v1370_v9 = vld [vmem:[#allocation8 + $0x138] sm:$0xff]  ;;  %v1365_v11 = vld [vmem:[#allocation8 + $0x110] sm:$0xff]  ;;  %v1376_v6 = vld [vmem:[#allocation8 + $0x168] sm:$0xff] }
 0x37a   : > { %v1030_v18 = vadd.f32 %v1029_v17, %v1006_v15  ;;  %v1180_v15 = vld [vmem:[#allocation7 + $0x48] sm:$0xff]  ;;  %v1369_v12 = vld [vmem:[#allocation8 + $0x130] sm:$0xff] }
 0x37b   : > { %v1191_v17 = vpack.c.bf16 %v1180_v15, %v1179_v14  ;;  %v1374_v14 = vld [vmem:[#allocation8 + $0x158] sm:$0xff] }
 0x37c   : > { %v1031_v19 = vmul.f32 0.0078125, %v1030_v18  ;;  %2104 = vmatpush3.bf16.msra.mxu0 %v1189_v10  ;;  %v1181_v18 = vld [vmem:[#allocation7 + $0x50] sm:$0xff]  ;;  %v1414_v10 = vpack.c.bf16 %v1370_v9, %v1366_v8  ;;  %v1378_v15 = vld [vmem:[#allocation8 + $0x178] sm:$0xff]  ;;  %v1416_v8 = vpack.c.bf16 %v1376_v6, %v1372_v5  ;;  %v1371_v9 = vld [vmem:[#allocation8 + $0x140] sm:$0xff] }
 0x37d   : > { %2105 = vmatprep.subr.bf16.mxu0 %v2554_v1  ;;  %v1561_v5 = vld [vmem:[#allocation10 + $0x120] sm:$0xff]  ;;  %v1562_v6 = vld [vmem:[#allocation10 + $0x128] sm:$0xff] }
 0x37e   : > { %v1032_v20 = vsel %vm3566_vm5, %v1031_v19, -inf  ;;  %1785 = vst.msk [vmem:[%s418_s20] sm:$0x1] %vm1784_vm13, %v1031_v19 }
 0x37f   : > { %1033 = vmax.xlane.f32.xlu0 %v1032_v20 }
 0x380   : > { %2106 = vmatpush3.bf16.msra.mxu0 %v1190_v13  ;;  %v1413_v13 = vpack.c.bf16 %v1369_v12, %v1365_v11  ;;  %v1380_v11 = vld [vmem:[#allocation8 + $0x188] sm:$0xff] }
 0x381   : > { %2107 = vmatprep.subr.bf16.mxu0 %v2554_v1  ;;  %v1384_v12 = vld [vmem:[#allocation8 + $0x1a8] sm:$0xff] }
 0x384   : > { %2108 = vmatpush3.bf16.msra.mxu0 %v1191_v17  ;;  %v1418_v17 = vpack.c.bf16 %v1378_v15, %v1374_v14  ;;  %v1420_v14 = vpack.c.bf16 %v1384_v12, %v1380_v11  ;;  %v1379_v15 = vld [vmem:[#allocation8 + $0x180] sm:$0xff]  ;;  %v1607_v12 = vpack.c.bf16 %v1562_v6, %v1561_v5  ;;  %v1571_v5 = vld [vmem:[#allocation10 + $0x170] sm:$0xff]  ;;  %v1572_v6 = vld [vmem:[#allocation10 + $0x178] sm:$0xff] }
 0x385   : > { %2109 = vmatprep.subr.bf16.mxu0 %v2554_v1 }
 0x40c   : > { %v1034_v21 = vpop.xlane.xlu0 %1033 }
 0x40d   : > { %2173 = vpush %v1034_v21  ;;  %v1183_v21 = vld [vmem:[#allocation7 + $0x60] sm:$0xff] }
 0x43e   : > { %s2174_s29 = spop %2173 }
 0x43f   : > { %v1036_v22 = vstv %s2174_s29 }
 0x440   : > { %vm1037_vm6 = vcmp.eq.f32.partialorder %v1031_v19, %v1036_v22  ;;  %v1082_v37 = vsub.f32 %v1036_v22, %v1036_v22 }
 0x441   : > { %v1038_v23 = vsel %vm1037_vm6, %v2869_v41, 16 }
 0x442   : > { %v1039_v24 = vsel %vm3567_vm12, %v1038_v23, 2147483647  ;;  %v1083_v38 = vmul.f32 1.442695, %v1082_v37  ;;  %v1186_v37 = vld [vmem:[#allocation7 + $0x78] sm:$0xff] }
 0x443   : > { %v1041_v25 = vshra.s32 %v1039_v24, 16  ;;  %v1040_v44 = vand.u32 65535, %v1039_v24 }
 0x444   : > { %2284 = vpow2.f32 %v1083_v38 }
 0x445   : > { %v1043_v26 = vcvt.s32.f32 %v1041_v25  ;;  %v1042_v28 = vcvt.s32.f32 %v1040_v44 }
 0x447   : > { %1044 = vmin.xlane.f32.xlu1 %v1043_v26 }
 0x44e   : > { %v2285_v49 = vpop.eup %2284 }
 0x4d4   : > { %v1045_v27 = vpop.xlane.xlu1 %1044 }
 0x4d5   : > { %vm1046_vm9 = vcmp.eq.f32.partialorder %v1043_v26, %v1045_v27  ;;  %v1051_v30 = vcvt.f32.s32 %v1045_v27 }
 0x4d6   : > { %v1047_v29 = vsel %vm1046_vm9, %v1042_v28, inf }
 0x4d7   : > { %1048 = vmin.xlane.f32.xlu0 %v1047_v29  ;;  %v1052_v32 = vshll.u32 %v1051_v30, 16 }
 0x564   : > { %v1049_v31 = vpop.xlane.xlu0 %1048 }
 0x565   : > { %v1050_v33 = vcvt.f32.s32 %v1049_v31 }
 0x567   : > { %v1053_v34 = vadd.s32 %v1052_v32, %v1050_v33 }
 0x569   : > { %2175 = vpush %v1053_v34 }
 0x59a   : > { %s2176_s14 = spop %2175 }
 0x59b   : > { %v1055_v35 = vstv %s2176_s14 }
 0x59c   : > { %vm1056_vm10 = vcmp.eq.s32.totalorder %v2869_v41, %v1055_v35  ;;  %v1973_v52 = vadd.s32 4294967280, %v1055_v35  ;;  %vm1094_vm7 = vcmp.eq.s32.totalorder %v3267_v53, %v1055_v35  ;;  %vm1095_vm8 = vcmp.eq.s32.totalorder %v3271_v55, %v1055_v35 }
 0x59d   : > { %v1057_v43 = vsel %vm1056_vm10, -1e+30, %v1031_v19  ;;  %v1182_v19 = vld [vmem:[#allocation7 + $0x58] sm:$0xff] }
 0x59e   : > { %v1058_v54 = vsel %vm3568_vm2, %v1057_v43, -inf  ;;  %vm1097_vm15 = vcmp.eq.s32.totalorder %v3267_v53, %v1973_v52  ;;  %vm1098_vm11 = vcmp.eq.s32.totalorder %v3271_v55, %v1973_v52  ;;  %v1192_v20 = vpack.c.bf16 %v1182_v19, %v1181_v18  ;;  %vm3570_vm2 = vmmov %vm3569_vm1  ;;  %v1373_v18 = vld [vmem:[#allocation8 + $0x150] sm:$0xff] }
 0x59f   : > { %1059 = vmax.xlane.f32.xlu1 %v1058_v54  ;;  %vm1099_vm4 = vmor %vm1094_vm7, %vm1097_vm15  ;;  %v1377_v19 = vld [vmem:[#allocation8 + $0x170] sm:$0xff] }
 0x5a0   : > { %vm1100_vm3 = vmor %vm1095_vm8, %vm1098_vm11  ;;  %v1974_v58 = vsel %vm1099_vm4, 1.0, %v2554_v1  ;;  %2110 = vmatpush3.bf16.msra.mxu0 %v1192_v20  ;;  %v1417_v20 = vpack.c.bf16 %v1377_v19, %v1373_v18  ;;  %v1388_v19 = vld [vmem:[#allocation8 + $0x1c8] sm:$0xff] }
 0x5a1   : > { %v1975_v16 = vsel %vm1100_vm3, 1.0, %v2554_v1  ;;  %2111 = vmatprep.subr.bf16.mxu0 %v2554_v1 }
 0x62c   : > { %v1060_v36 = vpop.xlane.xlu1 %1059 }
 0x62d   : > { %2177 = vpush %v1060_v36  ;;  %v1185_v36 = vld [vmem:[#allocation7 + $0x70] sm:$0xff] }
 0x62e   : > { %v1194_v38 = vpack.c.bf16 %v1186_v37, %v1185_v36 }
 0x65e   : > { %s2178_s24 = spop %2177 }
 0x65f   : > { %v1062_v62 = vstv %s2178_s24  ;;  %s1820_s24 = sshll.u32 %s418_s20, 4  ;;  %s1821_s24 = int_to_ptr.vmem [resolvable:$true] %s1820_s24 }
 0x660   : > { %vm1063_vm0 = vcmp.eq.f32.partialorder %v1057_v43, %v1062_v62  ;;  %v1085_v39 = vsub.f32 %v1062_v62, %v1036_v22  ;;  %v1184_v22 = vld [vmem:[#allocation7 + $0x68] sm:$0xff]  ;;  %s2434_s25 = scalar_lea.vmem %s1821_s24, 16  ;;  %p2441_p3 = scmp.lt.s32.totalorder %s1821_s24, %s2439_s17 }
 0x661   : > { %v1064_v40 = vsel %vm1063_vm0, %v2869_v41, 16  ;;  %v1193_v23 = vpack.c.bf16 %v1184_v22, %v1183_v21  ;;  %vm3571_vm0 = vmmov %vm3569_vm1  ;;  %v1382_v21 = vld [vmem:[#allocation8 + $0x198] sm:$0xff]  ;;  %p2435_p6 = scmp.ne.s32.totalorder %s1821_s24, %s2434_s25  ;;  %p2442_p7 = scmp.lt.s32.totalorder %s2440_s16, %s2434_s25 }
 0x662   : > { %v1086_v45 = vmul.f32 1.442695, %v1085_v39  ;;  %v1065_v46 = vsel %vm3569_vm1, %v1064_v40, 2147483647  ;;  %v1386_v22 = vld [vmem:[#allocation8 + $0x1b8] sm:$0xff]  ;;  %vm3572_vm1 = vmmov %vm3571_vm0 }
 0x663   : > { %v1067_v47 = vshra.s32 %v1065_v46, 16  ;;  %v1066_v42 = vand.u32 65535, %v1065_v46  ;;  %2112 = vmatpush3.bf16.msra.mxu0 %v1193_v23  ;;  %v1422_v23 = vpack.c.bf16 %v1386_v22, %v1382_v21  ;;  %v1390_v21 = vld [vmem:[#allocation8 + $0x1d8] sm:$0xff]  ;;  %vm3573_vm15 = vmmov %vm3571_vm0  ;;  %p2436_p8 = pnand %p2435_p6, %p2764_p4  ;;  %p2443_p9 = por %p2442_p7, %p2441_p3 }
 0x664   : > { %2286 = vpow2.f32 %v1086_v45  ;;  %2113 = vmatprep.subr.bf16.mxu0 %v2554_v1  ;;  %vm3574_vm11 = vmmov %vm3571_vm0 }
 0x665   : > { %v1069_v48 = vcvt.s32.f32 %v1067_v47  ;;  %v1068_v61 = vcvt.s32.f32 %v1066_v42  ;;  %v1334_v47 = vld [vmem:[#allocation8 + $0x18] sm:$0xff]  ;;  %p2437_p13 = pneg %p2436_p8 }
 0x667   : > { %1070 = vmin.xlane.f32.xlu0 %v1069_v48  ;;  %2114 = vmatpush3.bf16.msra.mxu0 %v1194_v38  ;;  %p2444_p12 = pnand %p2443_p9, %p2437_p13 }
 0x66e   : > { %v3262_v50 = vpop.eup %2286 }
 0x66f   : > { %v1088_v51 = vadd.f32 %v3262_v50, %v2285_v49 }
 0x671   : > { %2288 = vrcp.f32 %v1088_v51  ;;  %v1337_v51 = vld [vmem:[#allocation8 + $0x30] sm:$0xff] }
 0x67b   : > { %v2289_v56 = vpop.eup %2288 }
 0x67c   : > { %v1090_v57 = vmul.f32 %v2289_v56, %v2285_v49  ;;  %v1091_v30 = vmul.f32 %v2289_v56, %v3262_v50  ;;  %v1333_v50 = vld [vmem:[#allocation8 + $0x10] sm:$0xff] }
 0x67d   : > { %v1397_v52 = vpack.c.bf16 %v1337_v51, %v1333_v50  ;;  %v1343_v50 = vld [vmem:[#allocation8 + $0x60] sm:$0xff]  ;;  %v1348_v51 = vld [vmem:[#allocation8 + $0x88] sm:$0xff] }
 0x67e   : > { %v3279_v59 = vmul.f32 %v1974_v58, %v1090_v57  ;;  %v3281_v41 = vmul.f32 %v1975_v16, %v1090_v57  ;;  %v1341_v57 = vld [vmem:[#allocation8 + $0x50] sm:$0xff] }
 0x67f   : > { %v1345_v58 = vld [vmem:[#allocation8 + $0x70] sm:$0xff] }
 0x680   : > { %v1401_v16 = vpack.c.bf16 %v1345_v58, %v1341_v57  ;;  %v1351_v57 = vld [vmem:[#allocation8 + $0xa0] sm:$0xff]  ;;  %v1356_v58 = vld [vmem:[#allocation8 + $0xc8] sm:$0xff] }
 0x6f4   : > { %v1071_v60 = vpop.xlane.xlu0 %1070 }
 0x6f5   : > { %vm1072_vm14 = vcmp.eq.f32.partialorder %v1069_v48, %v1071_v60  ;;  %v1077_v24 = vcvt.f32.s32 %v1071_v60  ;;  %v1338_v48 = vld [vmem:[#allocation8 + $0x38] sm:$0xff]  ;;  %v1349_v60 = vld [vmem:[#allocation8 + $0x90] sm:$0xff] }
 0x6f6   : > { %v1073_v63 = vsel %vm1072_vm14, %v1068_v61, inf  ;;  %v1398_v49 = vpack.c.bf16 %v1338_v48, %v1334_v47  ;;  %v1353_v61 = vld [vmem:[#allocation8 + $0xb0] sm:$0xff] }
 0x6f7   : > { %1074 = vmin.xlane.f32.xlu1 %v1073_v63  ;;  %v1078_v26 = vshll.u32 %v1077_v24, 16  ;;  %v1405_v63 = vpack.c.bf16 %v1353_v61, %v1349_v60  ;;  %v1381_v24 = vld [vmem:[#allocation8 + $0x190] sm:$0xff]  ;;  %v1359_v60 = vld [vmem:[#allocation8 + $0xe0] sm:$0xff]  ;;  %v1364_v61 = vld [vmem:[#allocation8 + $0x108] sm:$0xff] }
 0x6f8   : > { %1470 = vmatprep.subr.bf16.mxu0 %v1398_v49  ;;  %v1339_v49 = vld [vmem:[#allocation8 + $0x40] sm:$0xff] }
 0x784   : > { %v1075_v25 = vpop.xlane.xlu1 %1074 }
 0x785   : > { %v1076_v44 = vcvt.f32.s32 %v1075_v25  ;;  %v1385_v25 = vld [vmem:[#allocation8 + $0x1b0] sm:$0xff] }
 0x787   : > { %v1079_v27 = vadd.s32 %v1078_v26, %v1076_v44  ;;  %v1421_v26 = vpack.c.bf16 %v1385_v25, %v1381_v24  ;;  %v1980_v44 = vld [vmem:[%s3422_s4] ss:$0 sm:$0xff] }
 0x788   : > { %v1387_v24 = vld [vmem:[#allocation8 + $0x1c0] sm:$0xff] }
 0x789   : > { %2179 = vpush %v1079_v27  ;;  %v1391_v25 = vld [vmem:[#allocation8 + $0x1e0] sm:$0xff] }
 0x7ba   : > { %s2180_s19 = spop %2179 }
 0x7bb   : > { %v1081_v28 = vstv %s2180_s19  ;;  %s1792_s19 = scalar_lea.sflag [#allocation13], %s2819_s23 }
 0x7bc   : > { %v1976_v29 = vadd.s32 4294967280, %v1081_v28  ;;  %vm1109_vm13 = vcmp.eq.s32.totalorder %v3267_v53, %v1081_v28  ;;  %vm1110_vm12 = vcmp.eq.s32.totalorder %v3271_v55, %v1081_v28 }
 0x7be   : > { %vm1112_vm5 = vcmp.eq.s32.totalorder %v3267_v53, %v1976_v29  ;;  %vm1113_vm6 = vcmp.eq.s32.totalorder %v3271_v55, %v1976_v29  ;;  %v1342_v53 = vld [vmem:[#allocation8 + $0x58] sm:$0xff] }
 0x7bf   : > { %vm1114_vm9 = vmor %vm1109_vm13, %vm1112_vm5  ;;  %v1346_v55 = vld [vmem:[#allocation8 + $0x78] sm:$0xff] }
 0x7c0   : > { %vm1115_vm10 = vmor %vm1110_vm12, %vm1113_vm6  ;;  %v1977_v31 = vsel %vm1114_vm9, 1.0, %v2554_v1  ;;  %v1402_v56 = vpack.c.bf16 %v1346_v55, %v1342_v53  ;;  %v1399_v53 = vpack.c.bf16 %v1343_v50, %v1339_v49  ;;  %v1575_v49 = vld [vmem:[#allocation10 + $0x190] sm:$0xff]  ;;  %v1576_v50 = vld [vmem:[#allocation10 + $0x198] sm:$0xff] }
 0x7c1   : > { %v1978_v32 = vsel %vm1115_vm10, 1.0, %v2554_v1  ;;  %v1120_v33 = vmul.f32 %v1977_v31, %v1091_v30  ;;  %v3304_v1 = vld [vmem:[%s3425_s7] sm:$0xff] }
 0x7c2   : > { %v1121_v34 = vmul.f32 %v1978_v32, %v1091_v30 }
 0x7c3   : > { %v1122_v35 = vadd.f32 %v1120_v33, %v3279_v59  ;;  %v1350_v59 = vld [vmem:[#allocation8 + $0x98] sm:$0xff]  ;;  %v1332_v33 = vld [vmem:[#allocation8 + $0x8] sm:$0xff] }
 0x7c4   : > { %v1123_v43 = vadd.f32 %v1121_v34, %v3281_v41  ;;  %v1354_v41 = vld [vmem:[#allocation8 + $0xb8] sm:$0xff]  ;;  %v1336_v34 = vld [vmem:[#allocation8 + $0x28] sm:$0xff] }
 0x7c5   : > { %v1406_v42 = vpack.c.bf16 %v1354_v41, %v1350_v59  ;;  %v1396_v38 = vpack.c.bf16 %v1336_v34, %v1332_v33  ;;  %v1574_v33 = vld [vmem:[#allocation10 + $0x188] sm:$0xff] }
 0x7c6   : > { %v1124_v54 = vpack.c.bf16 %v1123_v43, %v1122_v35  ;;  %v2290_v35 = vld [vmem:[%s2825_s21] sm:$0xff] }
 0x7c8   : > { %2096 = vmatmul.mubr.msk.bf16.vlgmr.msra.gmra.mrb[8].mxu1 %vm3570_vm2, %v1124_v54  ;;  %v2291_v54 = vld [vmem:[%s2825_s21 + $0x8] sm:$0xff]  ;;  %s1988_s21 = sshll.u32 %s2631_s13, 4 }
 0x7c9   : > { %2123 = vmatprep.mubr.msk.f32.mxu1 %vm3571_vm0, %v3304_v1  ;;  %s3345_s14 = scalar_lea.hbm %s3427_s9, %s1988_s21 }
 0x89b   : > { %v1163_v62 = vpop.f32.mrb[8].mxu1 }
 0x89c   : > { %v2097_v39 = vpop.f32.mrb[9].mxu1 }
 0x89d   : > { %v1166_v40 = vpop.f32.mrb[10].mxu1  ;;  %v1335_v39 = vld [vmem:[#allocation8 + $0x20] sm:$0xff] }
 0x89e   : > { %v1170_v45 = vpack.c.bf16 %v1166_v40, %v1163_v62  ;;  %v2098_v46 = vpop.f32.mrb[11].mxu1  ;;  %v1331_v62 = vld [vmem:[#allocation8] sm:$0xff]  ;;  %v1340_v40 = vld [vmem:[#allocation8 + $0x48] sm:$0xff] }
 0x89f   : > { %v3322_v46 = vld [vmem:[%s3425_s7 + $0x8] sm:$0xff]  ;;  %v1395_v47 = vpack.c.bf16 %v1335_v39, %v1331_v62  ;;  %v1557_v62 = vld [vmem:[#allocation10 + $0x100] sm:$0xff] }
 0x8a0   : > { %2116 = vmatmul.mubr.bf16.vlgmr.msra.gmra.mrb[4].mxu0 %v1170_v45  ;;  %v1344_v45 = vld [vmem:[#allocation8 + $0x68] sm:$0xff] }
 0x8a1   : > { %1502 = vmatprep.mubr.bf16.mxu0 %v2553_v0  ;;  %1471 = vmatpush1.bf16.msra.mxu0 %v1397_v52  ;;  %v1400_v48 = vpack.c.bf16 %v1344_v45, %v1340_v40  ;;  %v1352_v52 = vld [vmem:[#allocation8 + $0xa8] sm:$0xff]  ;;  %v1543_v40 = vld [vmem:[#allocation10 + $0x90] sm:$0xff] }
 0x8a2   : > { %1472 = vmatprep.subr.bf16.mxu0 %v1402_v56  ;;  %v1404_v55 = vpack.c.bf16 %v1352_v52, %v1348_v51  ;;  %v1347_v56 = vld [vmem:[#allocation8 + $0x80] sm:$0xff]  ;;  %v1558_v39 = vld [vmem:[#allocation10 + $0x108] sm:$0xff] }
 0x8a3   : > { %v1403_v59 = vpack.c.bf16 %v1351_v57, %v1347_v56  ;;  %v1528_v56 = vld [vmem:[#allocation10 + $0x18] sm:$0xff] }
 0x8a5   : > { %1473 = vmatpush1.bf16.msra.mxu0 %v1401_v16  ;;  %v1360_v16 = vld [vmem:[#allocation8 + $0xe8] sm:$0xff] }
 0x8a6   : > { %1474 = vmatprep.subr.bf16.mxu0 %v1406_v42  ;;  %v1408_v41 = vpack.c.bf16 %v1360_v16, %v1356_v58  ;;  %v1355_v42 = vld [vmem:[#allocation8 + $0xc0] sm:$0xff]  ;;  %v1614_v16 = vpack.c.bf16 %v1576_v50, %v1575_v49 }
 0x8a7   : > { %v1407_v2 = vpack.c.bf16 %v1359_v60, %v1355_v42  ;;  %v1546_v42 = vld [vmem:[#allocation10 + $0xa8] sm:$0xff]  ;;  %v1577_v60 = vld [vmem:[#allocation10 + $0x1a0] sm:$0xff] }
 0x8a8   : > { %v1553_v50 = vld [vmem:[#allocation10 + $0xe0] sm:$0xff] }
 0x8a9   : > { %1475 = vmatpush1.bf16.msra.mxu0 %v1405_v63  ;;  %v1368_v63 = vld [vmem:[#allocation8 + $0x128] sm:$0xff] }
 0x8aa   : > { %1476 = vmatprep.subr.bf16.mxu0 %v1410_v4  ;;  %v1412_v3 = vpack.c.bf16 %v1368_v63, %v1364_v61  ;;  %v1363_v4 = vld [vmem:[#allocation8 + $0x100] sm:$0xff]  ;;  %v1578_v61 = vld [vmem:[#allocation10 + $0x1a8] sm:$0xff] }
 0x8ad   : > { %1477 = vmatpush1.bf16.msra.mxu0 %v1409_v7 }
 0x8ae   : > { %1478 = vmatprep.subr.bf16.mxu0 %v1414_v10  ;;  %v1375_v10 = vld [vmem:[#allocation8 + $0x160] sm:$0xff] }
 0x8b1   : > { %1479 = vmatpush1.bf16.msra.mxu0 %v1413_v13  ;;  %v1415_v13 = vpack.c.bf16 %v1375_v10, %v1371_v9  ;;  %v1579_v9 = vld [vmem:[#allocation10 + $0x1b0] sm:$0xff]  ;;  %v1580_v10 = vld [vmem:[#allocation10 + $0x1b8] sm:$0xff] }
 0x8b2   : > { %1480 = vmatprep.subr.bf16.mxu0 %v1418_v17  ;;  %v1383_v17 = vld [vmem:[#allocation8 + $0x1a0] sm:$0xff] }
 0x8b3   : > { %v1419_v18 = vpack.c.bf16 %v1383_v17, %v1379_v15  ;;  %v1616_v17 = vpack.c.bf16 %v1580_v10, %v1579_v9 }
 0x8b5   : > { %1481 = vmatpush1.bf16.msra.mxu0 %v1417_v20  ;;  %v1392_v20 = vld [vmem:[#allocation8 + $0x1e8] sm:$0xff] }
 0x8b6   : > { %1482 = vmatprep.subr.bf16.mxu0 %v1422_v23  ;;  %v1424_v22 = vpack.c.bf16 %v1392_v20, %v1388_v19  ;;  %v1394_v23 = vld [vmem:[#allocation8 + $0x1f8] sm:$0xff]  ;;  %v1549_v20 = vld [vmem:[#allocation10 + $0xc0] sm:$0xff] }
 0x8b7   : > { %v1564_v19 = vld [vmem:[#allocation10 + $0x138] sm:$0xff] }
 0x8b9   : > { %1483 = vmatpush1.bf16.msra.mxu0 %v1421_v26  ;;  %v1426_v26 = vpack.c.bf16 %v1394_v23, %v1390_v21  ;;  %v1550_v21 = vld [vmem:[#allocation10 + $0xc8] sm:$0xff] }
 0x8ba   : > { %v1582_v23 = vld [vmem:[#allocation10 + $0x1c8] sm:$0xff] }
 0x8bb   : > { %1484 = vmatprep.subr.bf16.mxu0 %v1426_v26  ;;  %v1533_v26 = vld [vmem:[#allocation10 + $0x40] sm:$0xff] }
 0x973   : > { %v1236_v27 = vpop.f32.mrb[4].mxu0 }
 0x974   : > { %v1237_v28 = vadd.f32 %v1980_v44, %v1236_v27  ;;  %v2117_v29 = vpop.f32.mrb[5].mxu0  ;;  %v1389_v27 = vld [vmem:[#allocation8 + $0x1d0] sm:$0xff] }
 0x975   : > { %v1239_v30 = vpop.f32.mrb[6].mxu0  ;;  %v1541_v29 = vld [vmem:[#allocation10 + $0x80] sm:$0xff] }
 0x976   : > { %v1240_v31 = vadd.f32 %v1980_v44, %v1239_v30  ;;  %v2118_v32 = vpop.f32.mrb[7].mxu0  ;;  %v3312_v43 = vadd.f32 %v2290_v35, %v1237_v28  ;;  %v1423_v44 = vpack.c.bf16 %v1391_v25, %v1387_v24  ;;  %v1393_v28 = vld [vmem:[#allocation8 + $0x1f0] sm:$0xff] }
 0x977   : > { %v1425_v30 = vpack.c.bf16 %v1393_v28, %v1389_v27  ;;  %v1573_v32 = vld [vmem:[#allocation10 + $0x180] sm:$0xff]  ;;  %v1601_v27 = vpack.c.bf16 %v1550_v21, %v1549_v20 }
 0x978   : > { %v3315_v36 = vadd.f32 %v2291_v54, %v1240_v31  ;;  %v1542_v31 = vld [vmem:[#allocation10 + $0x88] sm:$0xff]  ;;  %v1613_v35 = vpack.c.bf16 %v1574_v33, %v1573_v32  ;;  %v1525_v54 = vld [vmem:[#allocation10] sm:$0xff]  ;;  %v1552_v32 = vld [vmem:[#allocation10 + $0xd8] sm:$0xff] }
 0x979   : > { %v1597_v34 = vpack.c.bf16 %v1542_v31, %v1541_v29  ;;  %1485 = vmatpush1.bf16.msra.mxu0 %v1425_v30  ;;  %v1565_v29 = vld [vmem:[#allocation10 + $0x140] sm:$0xff]  ;;  %v1566_v30 = vld [vmem:[#allocation10 + $0x148] sm:$0xff]  ;;  %v1551_v31 = vld [vmem:[#allocation10 + $0xd0] sm:$0xff] }
 0x97a   : > { %v2133_v37 = vpack.c.bf16 %v3315_v36, %v3312_v43  ;;  %2041 = vmatprep.subr.bf16.mxu0 %v1613_v35  ;;  %v1583_v33 = vld [vmem:[#allocation10 + $0x1d0] sm:$0xff] }
 0x97c   : > { %2134 = vmatprep.subr.bf16.mxu1 %v2133_v37 }
 0x97d   : > { %2136 = vmatpush3.bf16.msra.mxu1 %v2133_v37  ;;  %v1526_v37 = vld [vmem:[#allocation10 + $0x8] sm:$0xff] }
 0x97e   : > { %1427 = vmatprep.subr.bf16.mxu1 %v1396_v38  ;;  %v1589_v52 = vpack.c.bf16 %v1526_v37, %v1525_v54  ;;  %v1609_v54 = vpack.c.bf16 %v1566_v30, %v1565_v29  ;;  %v1535_v37 = vld [vmem:[#allocation10 + $0x50] sm:$0xff] }
 0x980   : > { %2124 = vmatmul.mubr.msk.f32.vlgmr.msra.gmra.mrb[12].mxu1 %vm3572_vm1, %v3322_v46 }
 0x981   : > { %1428 = vmatpush1.bf16.msra.mxu1 %v1395_v47  ;;  %1459 = vmatprep.mubr.bf16.mxu1 %v2553_v0  ;;  %v1367_v0 = vld [vmem:[#allocation8 + $0x120] sm:$0xff] }
 0x982   : > { %1429 = vmatprep.subr.bf16.mxu1 %v1400_v48  ;;  %v1411_v7 = vpack.c.bf16 %v1367_v0, %v1363_v4  ;;  %v1544_v48 = vld [vmem:[#allocation10 + $0x98] sm:$0xff]  ;;  %v1615_v0 = vpack.c.bf16 %v1578_v61, %v1577_v60 }
 0x983   : > { %v1598_v58 = vpack.c.bf16 %v1544_v48, %v1543_v40  ;;  %v1567_v40 = vld [vmem:[#allocation10 + $0x150] sm:$0xff]  ;;  %v1556_v60 = vld [vmem:[#allocation10 + $0xf8] sm:$0xff] }
 0x985   : > { %1430 = vmatpush1.bf16.msra.mxu1 %v1399_v53  ;;  %v1605_v53 = vpack.c.bf16 %v1558_v39, %v1557_v62  ;;  %v1536_v39 = vld [vmem:[#allocation10 + $0x58] sm:$0xff] }
 0x986   : > { %1431 = vmatprep.subr.bf16.mxu1 %v1404_v55  ;;  %v1527_v55 = vld [vmem:[#allocation10 + $0x10] sm:$0xff]  ;;  %v1594_v48 = vpack.c.bf16 %v1536_v39, %v1535_v37 }
 0x989   : > { %1432 = vmatpush1.bf16.msra.mxu1 %v1403_v59  ;;  %v1559_v59 = vld [vmem:[#allocation10 + $0x110] sm:$0xff] }
 0x98a   : > { %1433 = vmatprep.subr.bf16.mxu1 %v1408_v41  ;;  %v1560_v41 = vld [vmem:[#allocation10 + $0x118] sm:$0xff] }
 0x98b   : > { %v1606_v63 = vpack.c.bf16 %v1560_v41, %v1559_v59  ;;  %v1569_v59 = vld [vmem:[#allocation10 + $0x160] sm:$0xff] }
 0x98d   : > { %1434 = vmatpush1.bf16.msra.mxu1 %v1407_v2  ;;  %v1529_v2 = vld [vmem:[#allocation10 + $0x20] sm:$0xff] }
 0x98e   : > { %1435 = vmatprep.subr.bf16.mxu1 %v1412_v3  ;;  %v1530_v3 = vld [vmem:[#allocation10 + $0x28] sm:$0xff] }
 0x98f   : > { %v1591_v11 = vpack.c.bf16 %v1530_v3, %v1529_v2  ;;  %v1588_v2 = vld [vmem:[#allocation10 + $0x1f8] sm:$0xff]  ;;  %v1539_v3 = vld [vmem:[#allocation10 + $0x70] sm:$0xff] }
 0x991   : > { %1436 = vmatpush1.bf16.msra.mxu1 %v1411_v7  ;;  %v1547_v7 = vld [vmem:[#allocation10 + $0xb0] sm:$0xff] }
 0x992   : > { %1437 = vmatprep.subr.bf16.mxu1 %v1416_v8  ;;  %v1548_v8 = vld [vmem:[#allocation10 + $0xb8] sm:$0xff] }
 0x993   : > { %v1600_v15 = vpack.c.bf16 %v1548_v8, %v1547_v7  ;;  %v1612_v8 = vpack.c.bf16 %v1572_v6, %v1571_v5 }
 0x995   : > { %1438 = vmatpush1.bf16.msra.mxu1 %v1415_v13  ;;  %v1531_v13 = vld [vmem:[#allocation10 + $0x30] sm:$0xff] }
 0x996   : > { %1439 = vmatprep.subr.bf16.mxu1 %v1420_v14  ;;  %v1532_v14 = vld [vmem:[#allocation10 + $0x38] sm:$0xff] }
 0x997   : > { %v1592_v24 = vpack.c.bf16 %v1532_v14, %v1531_v13 }
 0x999   : > { %1440 = vmatpush1.bf16.msra.mxu1 %v1419_v18  ;;  %v1563_v18 = vld [vmem:[#allocation10 + $0x130] sm:$0xff] }
 0x99a   : > { %1441 = vmatprep.subr.bf16.mxu1 %v1424_v22  ;;  %v1581_v22 = vld [vmem:[#allocation10 + $0x1c0] sm:$0xff]  ;;  %v1608_v25 = vpack.c.bf16 %v1564_v19, %v1563_v18 }
 0x99b   : > { %v1617_v28 = vpack.c.bf16 %v1582_v23, %v1581_v22 }
 0x99d   : > { %1442 = vmatpush1.bf16.msra.mxu1 %v1423_v44  ;;  %v1534_v44 = vld [vmem:[#allocation10 + $0x48] sm:$0xff] }
 0x99e   : > { %2019 = vmatprep.subr.bf16.mxu1 %v1597_v34  ;;  %v1584_v34 = vld [vmem:[#allocation10 + $0x1d8] sm:$0xff]  ;;  %v1593_v35 = vpack.c.bf16 %v1534_v44, %v1533_v26 }
 0x99f   : > { %v1618_v62 = vpack.c.bf16 %v1584_v34, %v1583_v33 }
 0xa53   : > { %v2125_v38 = vpop.f32.mrb[12].mxu1 }
 0xa54   : > { %v3328_v45 = vsub.f32 %v3315_v36, %v2125_v38  ;;  %v1319_v47 = vpop.f32.mrb[13].mxu1  ;;  %v1545_v36 = vld [vmem:[#allocation10 + $0xa0] sm:$0xff]  ;;  %v1602_v38 = vpack.c.bf16 %v1552_v32, %v1551_v31 }
 0xa55   : > { %v3331_v51 = vsub.f32 %v3312_v43, %v1319_v47  ;;  %v1590_v43 = vpack.c.bf16 %v1528_v56, %v1527_v55  ;;  %v1599_v4 = vpack.c.bf16 %v1546_v42, %v1545_v36  ;;  %v1568_v47 = vld [vmem:[#allocation10 + $0x158] sm:$0xff]  ;;  %v1586_v56 = vld [vmem:[#allocation10 + $0x1e8] sm:$0xff]  ;;  %v1555_v42 = vld [vmem:[#allocation10 + $0xf0] sm:$0xff] }
 0xa56   : > { %v1610_v49 = vpack.c.bf16 %v1568_v47, %v1567_v40  ;;  %v1570_v36 = vld [vmem:[#allocation10 + $0x168] sm:$0xff] }
 0xa57   : > { %v1330_v57 = vpack.c.bf16 %v3328_v45, %v3331_v51  ;;  %v1611_v61 = vpack.c.bf16 %v1570_v36, %v1569_v59 }
 0xa59   : > { %1460 = vmatmul.mubr.bf16.vlgmr.msra.gmra.mrb[16].mxu1 %v1330_v57  ;;  %1503 = vmatmul.mubr.bf16.vlgmr.msra.gmra.mrb[8].mxu0 %v1330_v57 }
 0xa5a   : > { %2020 = vmatpush3.bf16.msra.mxu1 %v1589_v52  ;;  %2042 = vmatpush3.bf16.msra.mxu0 %v1605_v53  ;;  %v1554_v52 = vld [vmem:[#allocation10 + $0xe8] sm:$0xff]  ;;  %v1585_v53 = vld [vmem:[#allocation10 + $0x1e0] sm:$0xff] }
 0xa5b   : > { %2021 = vmatprep.subr.bf16.mxu1 %v1598_v58  ;;  %2043 = vmatprep.subr.bf16.mxu0 %v1614_v16  ;;  %v1603_v55 = vpack.c.bf16 %v1554_v52, %v1553_v50  ;;  %v1619_v57 = vpack.c.bf16 %v1586_v56, %v1585_v53  ;;  %v1537_v58 = vld [vmem:[#allocation10 + $0x60] sm:$0xff]  ;;  %v1538_v16 = vld [vmem:[#allocation10 + $0x68] sm:$0xff] }
 0xa5c   : > { %v1595_v41 = vpack.c.bf16 %v1538_v16, %v1537_v58 }
 0xa5e   : > { %2022 = vmatpush3.bf16.msra.mxu1 %v1590_v43  ;;  %2044 = vmatpush3.bf16.msra.mxu0 %v1606_v63  ;;  %v1604_v43 = vpack.c.bf16 %v1556_v60, %v1555_v42  ;;  %v1587_v63 = vld [vmem:[#allocation10 + $0x1f0] sm:$0xff] }
 0xa5f   : > { %2023 = vmatprep.subr.bf16.mxu1 %v1599_v4  ;;  %2045 = vmatprep.subr.bf16.mxu0 %v1615_v0  ;;  %v1620_v4 = vpack.c.bf16 %v1588_v2, %v1587_v63  ;;  %v1540_v0 = vld [vmem:[#allocation10 + $0x78] sm:$0xff] }
 0xa60   : > { %v1596_v7 = vpack.c.bf16 %v1540_v0, %v1539_v3 }
 0xa62   : > { %2024 = vmatpush3.bf16.msra.mxu1 %v1591_v11  ;;  %2046 = vmatpush3.bf16.msra.mxu0 %v1607_v12 }
 0xa63   : > { %2025 = vmatprep.subr.bf16.mxu1 %v1600_v15  ;;  %2047 = vmatprep.subr.bf16.mxu0 %v1616_v17 }
 0xa66   : > { %2026 = vmatpush3.bf16.msra.mxu1 %v1592_v24  ;;  %2048 = vmatpush3.bf16.msra.mxu0 %v1608_v25 }
 0xa67   : > { %2027 = vmatprep.subr.bf16.mxu1 %v1601_v27  ;;  %2049 = vmatprep.subr.bf16.mxu0 %v1617_v28 }
 0xa6a   : > { %2028 = vmatpush3.bf16.msra.mxu1 %v1593_v35  ;;  %2050 = vmatpush3.bf16.msra.mxu0 %v1609_v54 }
 0xa6b   : > { %2029 = vmatprep.subr.bf16.mxu1 %v1602_v38  ;;  %2051 = vmatprep.subr.bf16.mxu0 %v1618_v62 }
 0xa6e   : > { %2030 = vmatpush3.bf16.msra.mxu1 %v1594_v48  ;;  %2052 = vmatpush3.bf16.msra.mxu0 %v1610_v49 }
 0xa6f   : > { %2031 = vmatprep.subr.bf16.mxu1 %v1603_v55  ;;  %2053 = vmatprep.subr.bf16.mxu0 %v1619_v57 }
 0xa72   : > { %2032 = vmatpush3.bf16.msra.mxu1 %v1595_v41  ;;  %2054 = vmatpush3.bf16.msra.mxu0 %v1611_v61 }
 0xa73   : > { %2033 = vmatprep.subr.bf16.mxu1 %v1604_v43  ;;  %2055 = vmatprep.subr.bf16.mxu0 %v1620_v4 }
 0xa76   : > { %2034 = vmatpush3.bf16.msra.mxu1 %v1596_v7  ;;  %2056 = vmatpush3.bf16.msra.mxu0 %v1612_v8 }
 0xb2c   : > { %v1461_v9 = vpop.f32.mrb[16].mxu1  ;;  %v1504_v10 = vpop.f32.mrb[8].mxu0 }
 0xb2d   : > { %v1463_v11 = vpop.f32.mrb[17].mxu1  ;;  %v1506_v12 = vpop.f32.mrb[9].mxu0  ;;  %v1513_v15 = vmax.f32 %v1461_v9, 0.0  ;;  %v1515_v17 = vmax.f32 %v1504_v10, 0.0 }
 0xb2e   : > { %v1465_v13 = vpop.f32.mrb[18].mxu1  ;;  %v1508_v14 = vpop.f32.mrb[10].mxu0  ;;  %v1514_v22 = vmax.f32 %v1463_v11, 0.0  ;;  %v1516_v23 = vmax.f32 %v1506_v12, 0.0 }
 0xb2f   : > { %v1517_v18 = vmax.f32 %v1465_v13, 0.0  ;;  %v1519_v19 = vmax.f32 %v1508_v14, 0.0  ;;  %v1467_v20 = vpop.f32.mrb[19].mxu1  ;;  %v1510_v21 = vpop.f32.mrb[11].mxu0 }
 0xb30   : > { %v1518_v24 = vmax.f32 %v1467_v20, 0.0  ;;  %v1520_v25 = vmax.f32 %v1510_v21, 0.0 }
 0xb31   : > { %v1521_v26 = vpack.c.bf16 %v1517_v18, %v1513_v15  ;;  %v1523_v44 = vpack.c.bf16 %v1519_v19, %v1515_v17 }
 0xb32   : > { %v1522_v27 = vpack.c.bf16 %v1518_v24, %v1514_v22  ;;  %v1524_v28 = vpack.c.bf16 %v1520_v25, %v1516_v23 }
 0xb34   : > { %1653 = vmatprep.mubr.bf16.mxu1 %v1522_v27  ;;  %1694 = vmatprep.mubr.bf16.mxu0 %v1524_v28 }
 0xb35   : > { %1654 = vmatmul.mubr.bf16.vlgmr.msra.gmra.mrb[20].mxu1 %v1521_v26  ;;  %1695 = vmatmul.mubr.bf16.vlgmr.msra.gmra.mrb[12].mxu0 %v1523_v44 }
 0xb36   : > { %2130 = vmatprep.mubr.msk.f32.mxu1 %vm3573_vm15, %v3304_v1 }
 0xc08   : > { %v2035_v29 = vpop.f32.mrb[20].mxu1  ;;  %v2057_v30 = vpop.f32.mrb[12].mxu0 }
 0xc09   : > { %v2036_v31 = vpop.f32.mrb[21].mxu1  ;;  %v2058_v32 = vpop.f32.mrb[13].mxu0 }
 0xc0a   : > { %v2037_v33 = vadd.f32 %v2036_v31, %v2035_v29  ;;  %v2059_v34 = vadd.f32 %v2058_v32, %v2057_v30  ;;  %v2038_v35 = vpop.f32.mrb[22].mxu1  ;;  %v2060_v54 = vpop.f32.mrb[14].mxu0 }
 0xc0b   : > { %v2039_v37 = vpop.f32.mrb[23].mxu1  ;;  %v2061_v38 = vpop.f32.mrb[15].mxu0 }
 0xc0c   : > { %v1697_v62 = vadd.f32 %v2059_v34, %v2037_v33  ;;  %v2040_v39 = vadd.f32 %v2039_v37, %v2038_v35  ;;  %v2062_v40 = vadd.f32 %v2061_v38, %v2060_v54 }
 0xc0e   : > { %v1700_v47 = vadd.f32 %v2062_v40, %v2040_v39  ;;  %v1703_v1 = vadd.f32 %v1697_v62, %v3331_v51 }
 0xc10   : > { %v1704_v48 = vadd.f32 %v1700_v47, %v3328_v45 }
 0xc12   : > { %v2137_v49 = vpack.c.bf16 %v1704_v48, %v1703_v1 }
 0xc14   : > { %2138 = vmatprep.subr.bf16.mxu1 %v2137_v49 }
 0xc15   : > { %2140 = vmatpush3.bf16.msra.mxu1 %v2137_v49 }
 0xc18   : > { %2131 = vmatmul.mubr.msk.f32.vlgmr.msra.gmra.mrb[14].mxu1 %vm3574_vm11, %v3322_v46 }
 0xc19   : > { %2447 = shalt.err (!%p2444_p12)
}
 0xc1a   : > { %s2448_s20 = scalar_lea.hbm %s3345_s14, 16  ;;  %s2452_s21 = scalar_lea.hbm %s3427_s9, 64 }
 0xc1b   : > { %p2449_p0 = scmp.ne.s32.totalorder %s3345_s14, %s2448_s20  ;;  %p2453_p11 = scmp.lt.u32.totalorder %s3345_s14, %s3427_s9 }
 0xc1c   : > { %p2454_p1 = scmp.lt.u32.totalorder %s2452_s21, %s2448_s20  ;;  %p2456_p6 = scmp.lt.u32.totalorder %s2448_s20, %s3345_s14 }
 0xc1d   : > { %p2450_p5 = pnand %p2449_p0, %p2764_p4 }
 0xc1e   : > { %p2455_p2 = por %p2454_p1, %p2453_p11 }
 0xc1f   : > { %p2451_p10 = pneg %p2450_p5 }
 0xc20   : > { %p2457_p8 = por %p2456_p6, %p2455_p2 }
 0xc22   : > { %p2458_p13 = pnand %p2457_p8, %p2451_p10 }
 0xc24   : > { %2461 = shalt.err (!%p2458_p13)
}
 0xc25   : > { %2200 = dma.vmem_to_hbm [thread:$0]  (%p2764_p4), %s1821_s24, 16, %s3345_s14, %s1792_s19  }
 0xc26   : > { %s412_s25 = scalar_lea.vmem [#allocation11], %s1967_s18  ;;  %s1992_s17 = sshll.u32 %s2631_s13, 8 }
 0xc27   : > { %s1804_s15 = sshll.u32 %s412_s25, 4  ;;  %s3375_s30 = scalar_lea.hbm %s3426_s8, %s1992_s17  ;;  %s3370_s15 = int_to_ptr.vmem [resolvable:$true] %s1804_s15 }
 0xc28   : > { %s1787_s14 = scalar_lea.sflag [#allocation4], %s2819_s23  ;;  %s2462_s18 = scalar_lea.vmem %s3370_s15, 256 }
 0xc29   : > { %p2463_p3 = scmp.ne.s32.totalorder %s3370_s15, %s2462_s18  ;;  %s2557_s13 = smov [#allocation11]  }
 0xc2a   : > { %s2466_s24 = sshll.u32 %s2557_s13, 4  ;;  %s2467_s24 = int_to_ptr.vmem [resolvable:$false] %s2466_s24 }
 0xc2b   : > { %p2464_p7 = pnand %p2463_p3, %p2764_p4  ;;  %s2468_s19 = scalar_lea.vmem %s2467_s24, 512 }
 0xc2c   : > { %p2469_p12 = scmp.lt.s32.totalorder %s3370_s15, %s2467_s24  ;;  %p2470_p0 = scmp.lt.s32.totalorder %s2468_s19, %s2462_s18 }
 0xc2d   : > { %p2465_p9 = pneg %p2464_p7 }
 0xc2e   : > { %p2471_p5 = por %p2470_p0, %p2469_p12 }
 0xc30   : > { %p2472_p10 = pnand %p2471_p5, %p2465_p9 }
 0xceb   : > { %v2132_v46 = vpop.f32.mrb[14].mxu1 }
 0xcec   : > { %v1781_v45 = vsub.f32 %v1704_v48, %v2132_v46  ;;  %v1771_v51 = vpop.f32.mrb[15].mxu1 }
 0xced   : > { %v1780_v50 = vsub.f32 %v1703_v1, %v1771_v51 }
 0xcee   : > { %1783 = vst [vmem:[%s412_s25 + $0x8] sm:$0xff] %v1781_v45 }
 0xcef   : > { %1782 = vst [vmem:[%s412_s25] sm:$0xff] %v1780_v50 }
 0xcf0   : > { %2475 = shalt.err (!%p2472_p10)
}
 0xcf1   : > { %s2476_s22 = scalar_lea.hbm %s3375_s30, 256  ;;  %s2480_s29 = scalar_lea.hbm %s3426_s8, 1024 }
 0xcf2   : > { %p2477_p11 = scmp.ne.s32.totalorder %s3375_s30, %s2476_s22  ;;  %p2481_p6 = scmp.lt.u32.totalorder %s3375_s30, %s3426_s8 }
 0xcf3   : > { %p2482_p8 = scmp.lt.u32.totalorder %s2480_s29, %s2476_s22  ;;  %p2484_p3 = scmp.lt.u32.totalorder %s2476_s22, %s3375_s30 }
 0xcf4   : > { %p2478_p1 = pnand %p2477_p11, %p2764_p4 }
 0xcf5   : > { %p2483_p13 = por %p2482_p8, %p2481_p6 }
 0xcf6   : > { %p2479_p2 = pneg %p2478_p1 }
 0xcf7   : > { %p2485_p7 = por %p2484_p3, %p2483_p13 }
 0xcf9   : > { %p2486_p9 = pnand %p2485_p7, %p2479_p2 }
 0xcfb   : > { %2489 = shalt.err (!%p2486_p9)
}
 0xcfc   : > { %s2558_s16 = smov 128   ;;  %s2559_s20 = smov 8  }
 0xcfd   : > { %2199 = dma.vmem_to_hbm [thread:$0]  (%p2764_p4), %s3370_s15, 256, %s3375_s30, %s1787_s14, %s2558_s16, %s2558_s16, %s2559_s20  }
 0xcfe PF: > { %s3575_s18 = sld [smem:[#allocation19_spill]]  ;;  %s3576_s13 = sld [smem:[#allocation20_spill]] }
 0xcff   : > { %p2236_p12 = scmp.ge.s32.totalorder %s2540_s12, 2 }
 0xd04   : > { %s1832_s24 = sand.u32 1, %s3575_s18   ;;  %p3577_p0 = scmp.ne.s32.totalorder %s3576_s13, 0 }
 0xd05   : > { %s1833_s19 = scalar_lea.sflag [#allocation4], %s1832_s24 }
 0xd06   : > { %p2221_p5 = pnand %p2236_p12, %p3577_p0 }
 0xd08   : > { %2519 = dma.done.wait (!%p2221_p5), %s1833_s19, 256  }
 0xd09   : > { %2521 = vsyncadd (!%p2221_p5), %s1833_s19, 4294967040  ;;  %s1842_s22 = scalar_lea.sflag [#allocation13], %s1832_s24 }
 0xd0a   : > { %2523 = dma.done.wait (!%p2221_p5), %s1842_s22, 16  }
 0xd0b   : > { %2525 = vsyncadd (!%p2221_p5), %s1842_s22, 4294967280  ;;  %p28_p4 = scmp.ge.s32.totalorder %s2754_s28, 6   ;;  %s3578_s30 = smov %s2532_s10 }
 0xd0c   : > { %s3579_s10 = smov %s2536_s11  ;;  %s3580_s11 = smov %s2770_s27 }
 0xd0d   : > { %s3581_s12 = smov %s2754_s28  ;;  %30 = sbr.rel (!%p28_p4) target bundleno = 11 (0xb), region = 130 }
 0xd14   :  { %1846 = vsyncpa [#allocation3], 1 }
 0xd15   :  { %1848 = vsyncpa [#allocation3 + $0x1], 1 }
 0xd16   :  { %1849 = vsyncpa [#allocation6], 1 }
 0xd17   :  { %1850 = vsyncpa [#allocation9], 1 }
 0xd18   :  { %1851 = vsyncpa [#allocation4], 1 }
 0xd19   :  { %1853 = vsyncpa [#allocation4 + $0x1], 1 }
 0xd1a   :  { %1854 = vsyncpa [#allocation13], 1 }
 0xd1b   :  { %1856 = vsyncpa [#allocation13 + $0x1], 1 }

</bundles_post_ra>
